<compile_context>
chip_gen: v5e
topology: v5e:2x2
jax: 0.10.0
libtpu: 0.0.40
codegen_flags: <defaults>
</compile_context>

<pallas_src>
import functools

import jax
import jax.numpy as jnp
from jax import lax
from jax.experimental import pallas as pl
from jax.experimental.pallas import tpu as pltpu


# ----------------------------- small helpers --------------------------------

def _round_up(n: int, m: int) -> int:
    return ((n + m - 1) // m) * m


def _cdiv(a: int, b: int) -> int:
    return (a + b - 1) // b


def _pad2(a, rows: int, cols: int):
    r, c = a.shape
    return jnp.pad(a, ((0, rows - r), (0, cols - c)))


def _device_kind() -> str:
    try:
        return jax.devices()[0].device_kind.lower()
    except Exception:
        return ""


def _vmem_budget_bytes(kind: str) -> int:
    if "v7" in kind:
        return 48 << 20          # 64 MiB physical per TC on v7x; keep headroom
    return 96 << 20              # v5e / v6e: 128 MiB physical


def _mxu_lane_align(kind: str) -> int:
    # v6e / v7x MXUs are 256x256; v5e and older are 128-wide.
    for tag in ("v2", "v3", "v4", "v5"):
        if tag in kind:
            return 128
    return 256


def _feature_width(max_dim: int, kind: str) -> int:
    if max_dim <= 128:
        return 128
    return _round_up(max_dim, _mxu_lane_align(kind))


# ------------------------------- kernels ------------------------------------

def _forest_kernel(x_ref, w1_ref, b1_ref, w2_ref, b2_ref, out_ref, *,
                   n_trees: int, unroll_trees: bool):
    """All trees VMEM-resident; one batch tile flows through the whole forest.

    x_ref:   (bt, P)      f32 batch tile (lane-dense, zero-padded features)
    w1_ref:  (T, P, P)    stacked first-layer weights (bf16 or f32)
    b1_ref:  (T, 1, P)    stacked first-layer biases (f32)
    w2_ref:  (T, P, P)    stacked second-layer weights
    b2_ref:  (T, 1, P)    stacked second-layer biases
    out_ref: (bt, P)      f32 output tile (sliced to out_dim in the wrapper)
    """
    h = x_ref[...].astype(jnp.float32)

    def tree_step(t, h):
        w1 = w1_ref[t]                                            # (P, P)
        # MXU matmul: bf16 (or f32) inputs, f32 accumulation; bias/relu in f32.
        h = jnp.dot(h.astype(w1.dtype), w1,
                    preferred_element_type=jnp.float32) + b1_ref[t]
        h = jnp.maximum(h, 0.0)
        w2 = w2_ref[t]
        h = jnp.dot(h.astype(w2.dtype), w2,
                    preferred_element_type=jnp.float32) + b2_ref[t]
        return h

    if unroll_trees:
        for t in range(n_trees):                  # small static T: fully unrolled
            h = tree_step(t, h)
    else:
        # Larger T: keep one loop body visible to the scheduler (bounds live ranges).
        h = lax.fori_loop(0, n_trees, tree_step, h, unroll=2)

    # Final sigmoid: exp on the EUP, exact reciprocal (tolerance-safe).
    out_ref[...] = pl.reciprocal(1.0 + jnp.exp(-h), approx=False)


def _stream_kernel(x_ref, w1_ref, b1_ref, w2_ref, b2_ref, out_ref, h_ref):
    """One tree per grid step along axis 1; activations carried in VMEM scratch.

    Used when the whole forest's weights would crowd VMEM (v7x 64 MiB ceiling).
    x_ref (bt,P), w*_ref (1,P,P), b*_ref (1,1,P), out_ref (bt,P), h_ref (bt,P) f32.
    """
    t = pl.program_id(1)

    @pl.when(t == 0)
    def _():
        h_ref[...] = x_ref[...].astype(jnp.float32)

    w1 = w1_ref[0]
    h = jnp.dot(h_ref[...].astype(w1.dtype), w1,
                preferred_element_type=jnp.float32) + b1_ref[0]
    h = jnp.maximum(h, 0.0)
    w2 = w2_ref[0]
    h = jnp.dot(h.astype(w2.dtype), w2,
                preferred_element_type=jnp.float32) + b2_ref[0]
    h_ref[...] = h

    @pl.when(t == pl.num_programs(1) - 1)
    def _():
        out_ref[...] = pl.reciprocal(1.0 + jnp.exp(-h), approx=False)


# ------------------------------- wrapper -------------------------------------

def superforest_forward(x, trees, *, batch_tile=None, param_dtype=jnp.bfloat16,
                        force_stream_trees: bool = False):
    """trees: list of (W1 (in,hid), b1 (hid,), W2 (hid,out), b2 (out,)) tuples,
    weights stored as (in_dim, out_dim) so the kernel computes x @ W + b."""
    n_trees = len(trees)
    in_dim = trees[0][0].shape[0]
    hid_dim = trees[0][0].shape[1]
    out_dim = trees[-1][2].shape[1]

    kind = _device_kind()
    p = _feature_width(max(in_dim, hid_dim, out_dim), kind)

    # Stack + zero-pad per-tree params into 4 arrays.  Zero padding is exact
    # (adds 0.0 contributions only).  Weights in param_dtype (bf16 default for the
    # MXU); biases stay f32 so all elementwise math is f32 on every generation.
    w1s = jnp.stack([_pad2(w1, p, p) for (w1, _, _, _) in trees]).astype(param_dtype)
    w2s = jnp.stack([_pad2(w2, p, p) for (_, _, w2, _) in trees]).astype(param_dtype)
    b1s = jnp.stack([jnp.pad(b1, (0, p - b1.shape[0]))[None, :]
                     for (_, b1, _, _) in trees]).astype(jnp.float32)
    b2s = jnp.stack([jnp.pad(b2, (0, p - b2.shape[0]))[None, :]
                     for (_, _, _, b2) in trees]).astype(jnp.float32)

    # Lane-pad x only (cheap, exact); NO batch pad -- the ragged last batch tile is
    # handled by Pallas block clamping (garbage rows never reach valid outputs).
    batch = x.shape[0]
    x_p = x.astype(jnp.float32)
    if x.shape[1] != p:
        x_p = jnp.pad(x_p, ((0, 0), (0, p - x.shape[1])))

    # ---- VMEM budgeting / path + tile selection ----
    budget = _vmem_budget_bytes(kind)
    w_item = jnp.dtype(param_dtype).itemsize
    weights_bytes = 2 * n_trees * p * p * w_item
    bias_bytes = 2 * n_trees * p * 4
    resident_worst = 2 * (weights_bytes + bias_bytes)     # worst case: double-buffered
    use_streaming = force_stream_trees or (resident_worst > 0.6 * budget)

    if batch_tile is None:
        batch_tile = 512 if "v7" in kind else 1024        # amortize per-step overhead

    if use_streaming:
        fixed = 2 * (2 * p * p * w_item + 2 * p * 4)      # 2 trees in flight (double-buf)
        per_row = (2 + 2 + 1 + 4) * p * 4                 # x dbuf + out dbuf + h scratch + temps
    else:
        fixed = resident_worst
        per_row = (2 + 2 + 4) * p * 4                     # x dbuf + out dbuf + temps

    avail = max(budget - fixed, 1 << 20)
    bt_cap = max(8, (avail // per_row) // 8 * 8)
    bt = max(8, min(batch_tile, bt_cap, _round_up(batch, 8)))
    if "v7" in kind and batch > 8:
        # Keep >=2 batch tiles so ("parallel", ...) can shard across v7x's two TCs.
        bt = min(bt, _round_up(_cdiv(batch, 2), 8))
    n_btiles = _cdiv(batch, bt)

    footprint = fixed + per_row * bt
    vmem_limit = int(min(budget, max(32 << 20, footprint * 3 // 2)))

    out_shape = jax.ShapeDtypeStruct((batch, p), jnp.float32)
    compiler_params_1d = pltpu.CompilerParams(
        dimension_semantics=("parallel",), vmem_limit_bytes=vmem_limit)

    if not use_streaming:
        kernel = functools.partial(_forest_kernel, n_trees=n_trees,
                                   unroll_trees=(n_trees <= 4))

        def call(single_buffer_params: bool):
            def const_spec(shape):
                idx = lambda i: (0,) * len(shape)
                if single_buffer_params:
                    # Constant block index -> one VMEM copy is enough (halves the
                    # resident weight footprint, frees room for bigger bt).
                    return pl.BlockSpec(shape, idx, pipeline_mode=pl.Buffered(1))
                return pl.BlockSpec(shape, idx)

            return pl.pallas_call(
                kernel,
                out_shape=out_shape,
                grid_spec=pltpu.PrefetchScalarGridSpec(
                    num_scalar_prefetch=0,
                    grid=(n_btiles,),
                    in_specs=[
                        pl.BlockSpec((bt, p), lambda i: (i, 0)),   # streamed batch tile
                        const_spec((n_trees, p, p)),               # W1s (resident)
                        const_spec((n_trees, 1, p)),               # b1s
                        const_spec((n_trees, p, p)),               # W2s
                        const_spec((n_trees, 1, p)),               # b2s
                    ],
                    out_specs=pl.BlockSpec((bt, p), lambda i: (i, 0)),
                ),
                compiler_params=compiler_params_1d,
            )(x_p, w1s, b1s, w2s, b2s)

        try:
            out_p = call(True)
        except Exception:
            # pl.Buffered(1) single-buffering not supported on this jax version:
            # fall back to default double-buffered constant blocks (still correct).
            out_p = call(False)
    else:
        out_p = pl.pallas_call(
            _stream_kernel,
            out_shape=out_shape,
            grid_spec=pltpu.PrefetchScalarGridSpec(
                num_scalar_prefetch=0,
                grid=(n_btiles, n_trees),
                in_specs=[
                    pl.BlockSpec((bt, p), lambda i, t: (i, 0)),
                    pl.BlockSpec((1, p, p), lambda i, t: (t, 0, 0)),
                    pl.BlockSpec((1, 1, p), lambda i, t: (t, 0, 0)),
                    pl.BlockSpec((1, p, p), lambda i, t: (t, 0, 0)),
                    pl.BlockSpec((1, 1, p), lambda i, t: (t, 0, 0)),
                ],
                out_specs=pl.BlockSpec((bt, p), lambda i, t: (i, 0)),
                scratch_shapes=[pltpu.VMEM((bt, p), jnp.float32)],
            ),
            compiler_params=pltpu.CompilerParams(
                dimension_semantics=("parallel", "arbitrary"),
                vmem_limit_bytes=vmem_limit,
            ),
        )(x_p, w1s, b1s, w2s, b2s)

    # Lane padding sliced off in the wrapper (free layout plumbing).
    return out_p[:, :out_dim]


# ------------------------- init + pure-JAX reference -------------------------

def init_superforest(key, num_layers, input_dim, hidden_dim, output_dim):
    """Deterministic synthetic init matching the PyTorch module's parameter shapes
    (weights stored here as (in_dim, out_dim), i.e. pre-transposed)."""
    dims = [(input_dim, hidden_dim, hidden_dim)]
    dims += [(hidden_dim, hidden_dim, hidden_dim)] * (num_layers - 1)
    dims += [(hidden_dim, hidden_dim, output_dim)]   # the `out` SuperTree

    trees = []
    for (d_in, d_hid, d_out) in dims:
        key, k1, k2, k3, k4 = jax.random.split(key, 5)
        s1 = 1.0 / jnp.sqrt(d_in)
        s2 = 1.0 / jnp.sqrt(d_hid)
        w1 = jax.random.uniform(k1, (d_in, d_hid), jnp.float32, -s1, s1)
        b1 = jax.random.uniform(k2, (d_hid,), jnp.float32, -s1, s1)
        w2 = jax.random.uniform(k3, (d_hid, d_out), jnp.float32, -s2, s2)
        b2 = jax.random.uniform(k4, (d_out,), jnp.float32, -s2, s2)
        trees.append((w1, b1, w2, b2))
    return trees


def superforest_reference(x, trees):
    h = x.astype(jnp.float32)
    for (w1, b1, w2, b2) in trees:
        h = jnp.maximum(h @ w1 + b1, 0.0)
        h = h @ w2 + b2
    return jax.nn.sigmoid(h)


# ----------------------------------- demo ------------------------------------

if __name__ == "__main__":
    key = jax.random.PRNGKey(0)

    # Config A: demo dims -> resident, unrolled tree loop.
    num_layers, input_dim, hidden_dim, output_dim = 3, 8, 32, 4
    batch = 16
    key, kx = jax.random.split(key)
    x = jax.random.normal(kx, (batch, input_dim), jnp.float32)
    trees = init_superforest(key, num_layers, input_dim, hidden_dim, output_dim)
    ref = superforest_reference(x, trees)

    # Exact f32 path (tight check against the f32 reference).
    out_f32 = jax.block_until_ready(
        superforest_forward(x, trees, param_dtype=jnp.float32))
    assert out_f32.shape == (batch, output_dim)
    assert jnp.allclose(out_f32, ref, atol=1e-5, rtol=1e-5), "f32 mismatch"

    # Default bf16-matmul path (looser tolerance).
    out_bf16 = jax.block_until_ready(superforest_forward(x, trees))
    assert jnp.allclose(out_bf16, ref, atol=2e-2, rtol=2e-2), "bf16 mismatch"

    # Config B: more trees (fori_loop path), ragged last batch tile, and the
    # tree-streaming path forced on to exercise the v7x fallback.
    num_layers2, in2, hid2, out2 = 7, 24, 32, 4
    batch2 = 20
    key, kx2 = jax.random.split(key)
    x2 = jax.random.normal(kx2, (batch2, in2), jnp.float32)
    trees2 = init_superforest(key, num_layers2, in2, hid2, out2)
    ref2 = superforest_reference(x2, trees2)

    out2a = jax.block_until_ready(
        superforest_forward(x2, trees2, batch_tile=8))
    assert out2a.shape == (batch2, out2)
    assert jnp.allclose(out2a, ref2, atol=2e-2, rtol=2e-2), "resident/fori mismatch"

    out2b = jax.block_until_ready(
        superforest_forward(x2, trees2, batch_tile=8, force_stream_trees=True))
    assert jnp.allclose(out2b, ref2, atol=2e-2, rtol=2e-2), "streaming mismatch"

    print("KERNEL_OK")
</pallas_src>

<mosaic_0001>
module attributes {stable_mosaic.version = 11 : i64} {
  func.func @_forest_kernel(%arg0: i32, %arg1: memref<16x128xf32, #tpu.memory_space<vmem>>, %arg2: memref<4x128x128xf32, #tpu.memory_space<vmem>>, %arg3: memref<4x1x128xf32, #tpu.memory_space<vmem>>, %arg4: memref<4x128x128xf32, #tpu.memory_space<vmem>>, %arg5: memref<4x1x128xf32, #tpu.memory_space<vmem>>, %arg6: memref<16x128xf32, #tpu.memory_space<vmem>>) attributes {dimension_semantics = [#tpu.dimension_semantics<parallel>], iteration_bounds = array<i64: 1>, scalar_prefetch = 0 : i64, scratch_operands = 0 : i64, tpu.core_type = #tpu.core_type<tc>, window_params = [{transform_indices = @transform_0, window_bounds = array<i64: 16, 128>}, {pipeline_mode = #tpu.pipeline_mode<synchronous>, transform_indices = @transform_1, window_bounds = array<i64: 4, 128, 128>}, {pipeline_mode = #tpu.pipeline_mode<synchronous>, transform_indices = @transform_2, window_bounds = array<i64: 4, 1, 128>}, {pipeline_mode = #tpu.pipeline_mode<synchronous>, transform_indices = @transform_3, window_bounds = array<i64: 4, 128, 128>}, {pipeline_mode = #tpu.pipeline_mode<synchronous>, transform_indices = @transform_4, window_bounds = array<i64: 4, 1, 128>}, {transform_indices = @transform_5, window_bounds = array<i64: 16, 128>}]} {
    %c0 = arith.constant 0 : index
    %c0_0 = arith.constant 0 : index
    %0 = vector.load %arg1[%c0, %c0_0] : memref<16x128xf32, #tpu.memory_space<vmem>>, vector<16x128xf32>
    %c0_1 = arith.constant 0 : index
    %c0_2 = arith.constant 0 : index
    %c0_3 = arith.constant 0 : index
    %1 = vector.load %arg2[%c0_1, %c0_2, %c0_3] : memref<4x128x128xf32, #tpu.memory_space<vmem>>, vector<1x128x128xf32>
    %2 = vector.shape_cast %1 : vector<1x128x128xf32> to vector<128x128xf32>
    %cst = arith.constant dense<0.000000e+00> : vector<16x128xf32>
    %3 = tpu.matmul %0, %2, %cst {dimension_numbers = #tpu.dot_dimension_numbers<[1], [0], [0], [1], [0, 0, 1, 1], [], []>} : vector<16x128xf32>, vector<128x128xf32>, vector<16x128xf32> -> vector<16x128xf32>
    %c0_4 = arith.constant 0 : index
    %c0_5 = arith.constant 0 : index
    %c0_6 = arith.constant 0 : index
    %4 = vector.load %arg3[%c0_4, %c0_5, %c0_6] : memref<4x1x128xf32, #tpu.memory_space<vmem>>, vector<1x1x128xf32>
    %5 = vector.shape_cast %4 : vector<1x1x128xf32> to vector<1x128xf32>
    %6 = vector.broadcast %5 : vector<1x128xf32> to vector<16x128xf32>
    %7 = arith.addf %3, %6 : vector<16x128xf32>
    %cst_7 = arith.constant 0.000000e+00 : f32
    %8 = vector.broadcast %cst_7 : f32 to vector<16x128xf32>
    %9 = arith.maximumf %7, %8 : vector<16x128xf32>
    %c0_8 = arith.constant 0 : index
    %c0_9 = arith.constant 0 : index
    %c0_10 = arith.constant 0 : index
    %10 = vector.load %arg4[%c0_8, %c0_9, %c0_10] : memref<4x128x128xf32, #tpu.memory_space<vmem>>, vector<1x128x128xf32>
    %11 = vector.shape_cast %10 : vector<1x128x128xf32> to vector<128x128xf32>
    %cst_11 = arith.constant dense<0.000000e+00> : vector<16x128xf32>
    %12 = tpu.matmul %9, %11, %cst_11 {dimension_numbers = #tpu.dot_dimension_numbers<[1], [0], [0], [1], [0, 0, 1, 1], [], []>} : vector<16x128xf32>, vector<128x128xf32>, vector<16x128xf32> -> vector<16x128xf32>
    %c0_12 = arith.constant 0 : index
    %c0_13 = arith.constant 0 : index
    %c0_14 = arith.constant 0 : index
    %13 = vector.load %arg5[%c0_12, %c0_13, %c0_14] : memref<4x1x128xf32, #tpu.memory_space<vmem>>, vector<1x1x128xf32>
    %14 = vector.shape_cast %13 : vector<1x1x128xf32> to vector<1x128xf32>
    %15 = vector.broadcast %14 : vector<1x128xf32> to vector<16x128xf32>
    %16 = arith.addf %12, %15 : vector<16x128xf32>
    %c1 = arith.constant 1 : index
    %c0_15 = arith.constant 0 : index
    %c0_16 = arith.constant 0 : index
    %17 = vector.load %arg2[%c1, %c0_15, %c0_16] : memref<4x128x128xf32, #tpu.memory_space<vmem>>, vector<1x128x128xf32>
    %18 = vector.shape_cast %17 : vector<1x128x128xf32> to vector<128x128xf32>
    %cst_17 = arith.constant dense<0.000000e+00> : vector<16x128xf32>
    %19 = tpu.matmul %16, %18, %cst_17 {dimension_numbers = #tpu.dot_dimension_numbers<[1], [0], [0], [1], [0, 0, 1, 1], [], []>} : vector<16x128xf32>, vector<128x128xf32>, vector<16x128xf32> -> vector<16x128xf32>
    %c1_18 = arith.constant 1 : index
    %c0_19 = arith.constant 0 : index
    %c0_20 = arith.constant 0 : index
    %20 = vector.load %arg3[%c1_18, %c0_19, %c0_20] : memref<4x1x128xf32, #tpu.memory_space<vmem>>, vector<1x1x128xf32>
    %21 = vector.shape_cast %20 : vector<1x1x128xf32> to vector<1x128xf32>
    %22 = vector.broadcast %21 : vector<1x128xf32> to vector<16x128xf32>
    %23 = arith.addf %19, %22 : vector<16x128xf32>
    %cst_21 = arith.constant 0.000000e+00 : f32
    %24 = vector.broadcast %cst_21 : f32 to vector<16x128xf32>
    %25 = arith.maximumf %23, %24 : vector<16x128xf32>
    %c1_22 = arith.constant 1 : index
    %c0_23 = arith.constant 0 : index
    %c0_24 = arith.constant 0 : index
    %26 = vector.load %arg4[%c1_22, %c0_23, %c0_24] : memref<4x128x128xf32, #tpu.memory_space<vmem>>, vector<1x128x128xf32>
    %27 = vector.shape_cast %26 : vector<1x128x128xf32> to vector<128x128xf32>
    %cst_25 = arith.constant dense<0.000000e+00> : vector<16x128xf32>
    %28 = tpu.matmul %25, %27, %cst_25 {dimension_numbers = #tpu.dot_dimension_numbers<[1], [0], [0], [1], [0, 0, 1, 1], [], []>} : vector<16x128xf32>, vector<128x128xf32>, vector<16x128xf32> -> vector<16x128xf32>
    %c1_26 = arith.constant 1 : index
    %c0_27 = arith.constant 0 : index
    %c0_28 = arith.constant 0 : index
    %29 = vector.load %arg5[%c1_26, %c0_27, %c0_28] : memref<4x1x128xf32, #tpu.memory_space<vmem>>, vector<1x1x128xf32>
    %30 = vector.shape_cast %29 : vector<1x1x128xf32> to vector<1x128xf32>
    %31 = vector.broadcast %30 : vector<1x128xf32> to vector<16x128xf32>
    %32 = arith.addf %28, %31 : vector<16x128xf32>
    %c2 = arith.constant 2 : index
    %c0_29 = arith.constant 0 : index
    %c0_30 = arith.constant 0 : index
    %33 = vector.load %arg2[%c2, %c0_29, %c0_30] : memref<4x128x128xf32, #tpu.memory_space<vmem>>, vector<1x128x128xf32>
    %34 = vector.shape_cast %33 : vector<1x128x128xf32> to vector<128x128xf32>
    %cst_31 = arith.constant dense<0.000000e+00> : vector<16x128xf32>
    %35 = tpu.matmul %32, %34, %cst_31 {dimension_numbers = #tpu.dot_dimension_numbers<[1], [0], [0], [1], [0, 0, 1, 1], [], []>} : vector<16x128xf32>, vector<128x128xf32>, vector<16x128xf32> -> vector<16x128xf32>
    %c2_32 = arith.constant 2 : index
    %c0_33 = arith.constant 0 : index
    %c0_34 = arith.constant 0 : index
    %36 = vector.load %arg3[%c2_32, %c0_33, %c0_34] : memref<4x1x128xf32, #tpu.memory_space<vmem>>, vector<1x1x128xf32>
    %37 = vector.shape_cast %36 : vector<1x1x128xf32> to vector<1x128xf32>
    %38 = vector.broadcast %37 : vector<1x128xf32> to vector<16x128xf32>
    %39 = arith.addf %35, %38 : vector<16x128xf32>
    %cst_35 = arith.constant 0.000000e+00 : f32
    %40 = vector.broadcast %cst_35 : f32 to vector<16x128xf32>
    %41 = arith.maximumf %39, %40 : vector<16x128xf32>
    %c2_36 = arith.constant 2 : index
    %c0_37 = arith.constant 0 : index
    %c0_38 = arith.constant 0 : index
    %42 = vector.load %arg4[%c2_36, %c0_37, %c0_38] : memref<4x128x128xf32, #tpu.memory_space<vmem>>, vector<1x128x128xf32>
    %43 = vector.shape_cast %42 : vector<1x128x128xf32> to vector<128x128xf32>
    %cst_39 = arith.constant dense<0.000000e+00> : vector<16x128xf32>
    %44 = tpu.matmul %41, %43, %cst_39 {dimension_numbers = #tpu.dot_dimension_numbers<[1], [0], [0], [1], [0, 0, 1, 1], [], []>} : vector<16x128xf32>, vector<128x128xf32>, vector<16x128xf32> -> vector<16x128xf32>
    %c2_40 = arith.constant 2 : index
    %c0_41 = arith.constant 0 : index
    %c0_42 = arith.constant 0 : index
    %45 = vector.load %arg5[%c2_40, %c0_41, %c0_42] : memref<4x1x128xf32, #tpu.memory_space<vmem>>, vector<1x1x128xf32>
    %46 = vector.shape_cast %45 : vector<1x1x128xf32> to vector<1x128xf32>
    %47 = vector.broadcast %46 : vector<1x128xf32> to vector<16x128xf32>
    %48 = arith.addf %44, %47 : vector<16x128xf32>
    %c3 = arith.constant 3 : index
    %c0_43 = arith.constant 0 : index
    %c0_44 = arith.constant 0 : index
    %49 = vector.load %arg2[%c3, %c0_43, %c0_44] : memref<4x128x128xf32, #tpu.memory_space<vmem>>, vector<1x128x128xf32>
    %50 = vector.shape_cast %49 : vector<1x128x128xf32> to vector<128x128xf32>
    %cst_45 = arith.constant dense<0.000000e+00> : vector<16x128xf32>
    %51 = tpu.matmul %48, %50, %cst_45 {dimension_numbers = #tpu.dot_dimension_numbers<[1], [0], [0], [1], [0, 0, 1, 1], [], []>} : vector<16x128xf32>, vector<128x128xf32>, vector<16x128xf32> -> vector<16x128xf32>
    %c3_46 = arith.constant 3 : index
    %c0_47 = arith.constant 0 : index
    %c0_48 = arith.constant 0 : index
    %52 = vector.load %arg3[%c3_46, %c0_47, %c0_48] : memref<4x1x128xf32, #tpu.memory_space<vmem>>, vector<1x1x128xf32>
    %53 = vector.shape_cast %52 : vector<1x1x128xf32> to vector<1x128xf32>
    %54 = vector.broadcast %53 : vector<1x128xf32> to vector<16x128xf32>
    %55 = arith.addf %51, %54 : vector<16x128xf32>
    %cst_49 = arith.constant 0.000000e+00 : f32
    %56 = vector.broadcast %cst_49 : f32 to vector<16x128xf32>
    %57 = arith.maximumf %55, %56 : vector<16x128xf32>
    %c3_50 = arith.constant 3 : index
    %c0_51 = arith.constant 0 : index
    %c0_52 = arith.constant 0 : index
    %58 = vector.load %arg4[%c3_50, %c0_51, %c0_52] : memref<4x128x128xf32, #tpu.memory_space<vmem>>, vector<1x128x128xf32>
    %59 = vector.shape_cast %58 : vector<1x128x128xf32> to vector<128x128xf32>
    %cst_53 = arith.constant dense<0.000000e+00> : vector<16x128xf32>
    %60 = tpu.matmul %57, %59, %cst_53 {dimension_numbers = #tpu.dot_dimension_numbers<[1], [0], [0], [1], [0, 0, 1, 1], [], []>} : vector<16x128xf32>, vector<128x128xf32>, vector<16x128xf32> -> vector<16x128xf32>
    %c3_54 = arith.constant 3 : index
    %c0_55 = arith.constant 0 : index
    %c0_56 = arith.constant 0 : index
    %61 = vector.load %arg5[%c3_54, %c0_55, %c0_56] : memref<4x1x128xf32, #tpu.memory_space<vmem>>, vector<1x1x128xf32>
    %62 = vector.shape_cast %61 : vector<1x1x128xf32> to vector<1x128xf32>
    %63 = vector.broadcast %62 : vector<1x128xf32> to vector<16x128xf32>
    %64 = arith.addf %60, %63 : vector<16x128xf32>
    %cst_57 = arith.constant 0.000000e+00 : f32
    %65 = vector.broadcast %cst_57 : f32 to vector<16x128xf32>
    %66 = arith.subf %65, %64 : vector<16x128xf32>
    %67 = math.exp %66 : vector<16x128xf32>
    %cst_58 = arith.constant 1.000000e+00 : f32
    %68 = vector.broadcast %cst_58 : f32 to vector<16x128xf32>
    %69 = arith.addf %68, %67 : vector<16x128xf32>
    %70 = tpu.reciprocal %69 : vector<16x128xf32> -> vector<16x128xf32>
    %c0_59 = arith.constant 0 : index
    %c0_60 = arith.constant 0 : index
    %71 = vector.load %arg6[%c0_59, %c0_60] : memref<16x128xf32, #tpu.memory_space<vmem>>, vector<16x128xf32>
    tpu.vector_store %arg6[%c0_59, %c0_60], %70 {strides = array<i32>} : memref<16x128xf32, #tpu.memory_space<vmem>>, vector<16x128xf32>,
    return
  }
  func.func @transform_0(%arg0: i32) -> (i32, i32) {
    %c0_i32 = arith.constant 0 : i32
    %c0_i32_0 = arith.constant 0 : i32
    return %arg0, %c0_i32 : i32, i32
  }
  func.func @transform_1(%arg0: i32) -> (i32, i32, i32) {
    %c0_i32 = arith.constant 0 : i32
    %c0_i32_0 = arith.constant 0 : i32
    %c0_i32_1 = arith.constant 0 : i32
    %c0_i32_2 = arith.constant 0 : i32
    return %c0_i32, %c0_i32_0, %c0_i32_1 : i32, i32, i32
  }
  func.func @transform_2(%arg0: i32) -> (i32, i32, i32) {
    %c0_i32 = arith.constant 0 : i32
    %c0_i32_0 = arith.constant 0 : i32
    %c0_i32_1 = arith.constant 0 : i32
    %c0_i32_2 = arith.constant 0 : i32
    return %c0_i32, %c0_i32_0, %c0_i32_1 : i32, i32, i32
  }
  func.func @transform_3(%arg0: i32) -> (i32, i32, i32) {
    %c0_i32 = arith.constant 0 : i32
    %c0_i32_0 = arith.constant 0 : i32
    %c0_i32_1 = arith.constant 0 : i32
    %c0_i32_2 = arith.constant 0 : i32
    return %c0_i32, %c0_i32_0, %c0_i32_1 : i32, i32, i32
  }
  func.func @transform_4(%arg0: i32) -> (i32, i32, i32) {
    %c0_i32 = arith.constant 0 : i32
    %c0_i32_0 = arith.constant 0 : i32
    %c0_i32_1 = arith.constant 0 : i32
    %c0_i32_2 = arith.constant 0 : i32
    return %c0_i32, %c0_i32_0, %c0_i32_1 : i32, i32, i32
  }
  func.func @transform_5(%arg0: i32) -> (i32, i32) {
    %c0_i32 = arith.constant 0 : i32
    %c0_i32_0 = arith.constant 0 : i32
    return %arg0, %c0_i32 : i32, i32
  }
}

module attributes {stable_mosaic.version = 11 : i64} {
  func.func @_forest_kernel(%arg0: i32, %arg1: memref<16x128xf32, #tpu.memory_space<vmem>>, %arg2: memref<4x128x128xf32, #tpu.memory_space<vmem>>, %arg3: memref<4x1x128xf32, #tpu.memory_space<vmem>>, %arg4: memref<4x128x128xf32, #tpu.memory_space<vmem>>, %arg5: memref<4x1x128xf32, #tpu.memory_space<vmem>>, %arg6: memref<16x128xf32, #tpu.memory_space<vmem>>) attributes {dimension_semantics = [#tpu.dimension_semantics<parallel>], iteration_bounds = array<i64: 1>, scalar_prefetch = 0 : i64, scratch_operands = 0 : i64, tpu.core_type = #tpu.core_type<tc>, window_params = [{transform_indices = @transform_0, window_bounds = array<i64: 16, 128>}, {pipeline_mode = #tpu.pipeline_mode<synchronous>, transform_indices = @transform_1, window_bounds = array<i64: 4, 128, 128>}, {pipeline_mode = #tpu.pipeline_mode<synchronous>, transform_indices = @transform_2, window_bounds = array<i64: 4, 1, 128>}, {pipeline_mode = #tpu.pipeline_mode<synchronous>, transform_indices = @transform_3, window_bounds = array<i64: 4, 128, 128>}, {pipeline_mode = #tpu.pipeline_mode<synchronous>, transform_indices = @transform_4, window_bounds = array<i64: 4, 1, 128>}, {transform_indices = @transform_5, window_bounds = array<i64: 16, 128>}]} {
    %c0 = arith.constant 0 : index
    %c0_0 = arith.constant 0 : index
    %0 = vector.load %arg1[%c0, %c0_0] : memref<16x128xf32, #tpu.memory_space<vmem>>, vector<16x128xf32>
    %c0_1 = arith.constant 0 : index
    %c0_2 = arith.constant 0 : index
    %c0_3 = arith.constant 0 : index
    %1 = vector.load %arg2[%c0_1, %c0_2, %c0_3] : memref<4x128x128xf32, #tpu.memory_space<vmem>>, vector<1x128x128xf32>
    %2 = vector.shape_cast %1 : vector<1x128x128xf32> to vector<128x128xf32>
    %cst = arith.constant dense<0.000000e+00> : vector<16x128xf32>
    %3 = tpu.matmul %0, %2, %cst {dimension_numbers = #tpu.dot_dimension_numbers<[1], [0], [0], [1], [0, 0, 1, 1], [], []>} : vector<16x128xf32>, vector<128x128xf32>, vector<16x128xf32> -> vector<16x128xf32>
    %c0_4 = arith.constant 0 : index
    %c0_5 = arith.constant 0 : index
    %c0_6 = arith.constant 0 : index
    %4 = vector.load %arg3[%c0_4, %c0_5, %c0_6] : memref<4x1x128xf32, #tpu.memory_space<vmem>>, vector<1x1x128xf32>
    %5 = vector.shape_cast %4 : vector<1x1x128xf32> to vector<1x128xf32>
    %6 = vector.broadcast %5 : vector<1x128xf32> to vector<16x128xf32>
    %7 = arith.addf %3, %6 : vector<16x128xf32>
    %cst_7 = arith.constant 0.000000e+00 : f32
    %8 = vector.broadcast %cst_7 : f32 to vector<16x128xf32>
    %9 = arith.maximumf %7, %8 : vector<16x128xf32>
    %c0_8 = arith.constant 0 : index
    %c0_9 = arith.constant 0 : index
    %c0_10 = arith.constant 0 : index
    %10 = vector.load %arg4[%c0_8, %c0_9, %c0_10] : memref<4x128x128xf32, #tpu.memory_space<vmem>>, vector<1x128x128xf32>
    %11 = vector.shape_cast %10 : vector<1x128x128xf32> to vector<128x128xf32>
    %cst_11 = arith.constant dense<0.000000e+00> : vector<16x128xf32>
    %12 = tpu.matmul %9, %11, %cst_11 {dimension_numbers = #tpu.dot_dimension_numbers<[1], [0], [0], [1], [0, 0, 1, 1], [], []>} : vector<16x128xf32>, vector<128x128xf32>, vector<16x128xf32> -> vector<16x128xf32>
    %c0_12 = arith.constant 0 : index
    %c0_13 = arith.constant 0 : index
    %c0_14 = arith.constant 0 : index
    %13 = vector.load %arg5[%c0_12, %c0_13, %c0_14] : memref<4x1x128xf32, #tpu.memory_space<vmem>>, vector<1x1x128xf32>
    %14 = vector.shape_cast %13 : vector<1x1x128xf32> to vector<1x128xf32>
    %15 = vector.broadcast %14 : vector<1x128xf32> to vector<16x128xf32>
    %16 = arith.addf %12, %15 : vector<16x128xf32>
    %c1 = arith.constant 1 : index
    %c0_15 = arith.constant 0 : index
    %c0_16 = arith.constant 0 : index
    %17 = vector.load %arg2[%c1, %c0_15, %c0_16] : memref<4x128x128xf32, #tpu.memory_space<vmem>>, vector<1x128x128xf32>
    %18 = vector.shape_cast %17 : vector<1x128x128xf32> to vector<128x128xf32>
    %cst_17 = arith.constant dense<0.000000e+00> : vector<16x128xf32>
    %19 = tpu.matmul %16, %18, %cst_17 {dimension_numbers = #tpu.dot_dimension_numbers<[1], [0], [0], [1], [0, 0, 1, 1], [], []>} : vector<16x128xf32>, vector<128x128xf32>, vector<16x128xf32> -> vector<16x128xf32>
    %c1_18 = arith.constant 1 : index
    %c0_19 = arith.constant 0 : index
    %c0_20 = arith.constant 0 : index
    %20 = vector.load %arg3[%c1_18, %c0_19, %c0_20] : memref<4x1x128xf32, #tpu.memory_space<vmem>>, vector<1x1x128xf32>
    %21 = vector.shape_cast %20 : vector<1x1x128xf32> to vector<1x128xf32>
    %22 = vector.broadcast %21 : vector<1x128xf32> to vector<16x128xf32>
    %23 = arith.addf %19, %22 : vector<16x128xf32>
    %cst_21 = arith.constant 0.000000e+00 : f32
    %24 = vector.broadcast %cst_21 : f32 to vector<16x128xf32>
    %25 = arith.maximumf %23, %24 : vector<16x128xf32>
    %c1_22 = arith.constant 1 : index
    %c0_23 = arith.constant 0 : index
    %c0_24 = arith.constant 0 : index
    %26 = vector.load %arg4[%c1_22, %c0_23, %c0_24] : memref<4x128x128xf32, #tpu.memory_space<vmem>>, vector<1x128x128xf32>
    %27 = vector.shape_cast %26 : vector<1x128x128xf32> to vector<128x128xf32>
    %cst_25 = arith.constant dense<0.000000e+00> : vector<16x128xf32>
    %28 = tpu.matmul %25, %27, %cst_25 {dimension_numbers = #tpu.dot_dimension_numbers<[1], [0], [0], [1], [0, 0, 1, 1], [], []>} : vector<16x128xf32>, vector<128x128xf32>, vector<16x128xf32> -> vector<16x128xf32>
    %c1_26 = arith.constant 1 : index
    %c0_27 = arith.constant 0 : index
    %c0_28 = arith.constant 0 : index
    %29 = vector.load %arg5[%c1_26, %c0_27, %c0_28] : memref<4x1x128xf32, #tpu.memory_space<vmem>>, vector<1x1x128xf32>
    %30 = vector.shape_cast %29 : vector<1x1x128xf32> to vector<1x128xf32>
    %31 = vector.broadcast %30 : vector<1x128xf32> to vector<16x128xf32>
    %32 = arith.addf %28, %31 : vector<16x128xf32>
    %c2 = arith.constant 2 : index
    %c0_29 = arith.constant 0 : index
    %c0_30 = arith.constant 0 : index
    %33 = vector.load %arg2[%c2, %c0_29, %c0_30] : memref<4x128x128xf32, #tpu.memory_space<vmem>>, vector<1x128x128xf32>
    %34 = vector.shape_cast %33 : vector<1x128x128xf32> to vector<128x128xf32>
    %cst_31 = arith.constant dense<0.000000e+00> : vector<16x128xf32>
    %35 = tpu.matmul %32, %34, %cst_31 {dimension_numbers = #tpu.dot_dimension_numbers<[1], [0], [0], [1], [0, 0, 1, 1], [], []>} : vector<16x128xf32>, vector<128x128xf32>, vector<16x128xf32> -> vector<16x128xf32>
    %c2_32 = arith.constant 2 : index
    %c0_33 = arith.constant 0 : index
    %c0_34 = arith.constant 0 : index
    %36 = vector.load %arg3[%c2_32, %c0_33, %c0_34] : memref<4x1x128xf32, #tpu.memory_space<vmem>>, vector<1x1x128xf32>
    %37 = vector.shape_cast %36 : vector<1x1x128xf32> to vector<1x128xf32>
    %38 = vector.broadcast %37 : vector<1x128xf32> to vector<16x128xf32>
    %39 = arith.addf %35, %38 : vector<16x128xf32>
    %cst_35 = arith.constant 0.000000e+00 : f32
    %40 = vector.broadcast %cst_35 : f32 to vector<16x128xf32>
    %41 = arith.maximumf %39, %40 : vector<16x128xf32>
    %c2_36 = arith.constant 2 : index
    %c0_37 = arith.constant 0 : index
    %c0_38 = arith.constant 0 : index
    %42 = vector.load %arg4[%c2_36, %c0_37, %c0_38] : memref<4x128x128xf32, #tpu.memory_space<vmem>>, vector<1x128x128xf32>
    %43 = vector.shape_cast %42 : vector<1x128x128xf32> to vector<128x128xf32>
    %cst_39 = arith.constant dense<0.000000e+00> : vector<16x128xf32>
    %44 = tpu.matmul %41, %43, %cst_39 {dimension_numbers = #tpu.dot_dimension_numbers<[1], [0], [0], [1], [0, 0, 1, 1], [], []>} : vector<16x128xf32>, vector<128x128xf32>, vector<16x128xf32> -> vector<16x128xf32>
    %c2_40 = arith.constant 2 : index
    %c0_41 = arith.constant 0 : index
    %c0_42 = arith.constant 0 : index
    %45 = vector.load %arg5[%c2_40, %c0_41, %c0_42] : memref<4x1x128xf32, #tpu.memory_space<vmem>>, vector<1x1x128xf32>
    %46 = vector.shape_cast %45 : vector<1x1x128xf32> to vector<1x128xf32>
    %47 = vector.broadcast %46 : vector<1x128xf32> to vector<16x128xf32>
    %48 = arith.addf %44, %47 : vector<16x128xf32>
    %c3 = arith.constant 3 : index
    %c0_43 = arith.constant 0 : index
    %c0_44 = arith.constant 0 : index
    %49 = vector.load %arg2[%c3, %c0_43, %c0_44] : memref<4x128x128xf32, #tpu.memory_space<vmem>>, vector<1x128x128xf32>
    %50 = vector.shape_cast %49 : vector<1x128x128xf32> to vector<128x128xf32>
    %cst_45 = arith.constant dense<0.000000e+00> : vector<16x128xf32>
    %51 = tpu.matmul %48, %50, %cst_45 {dimension_numbers = #tpu.dot_dimension_numbers<[1], [0], [0], [1], [0, 0, 1, 1], [], []>} : vector<16x128xf32>, vector<128x128xf32>, vector<16x128xf32> -> vector<16x128xf32>
    %c3_46 = arith.constant 3 : index
    %c0_47 = arith.constant 0 : index
    %c0_48 = arith.constant 0 : index
    %52 = vector.load %arg3[%c3_46, %c0_47, %c0_48] : memref<4x1x128xf32, #tpu.memory_space<vmem>>, vector<1x1x128xf32>
    %53 = vector.shape_cast %52 : vector<1x1x128xf32> to vector<1x128xf32>
    %54 = vector.broadcast %53 : vector<1x128xf32> to vector<16x128xf32>
    %55 = arith.addf %51, %54 : vector<16x128xf32>
    %cst_49 = arith.constant 0.000000e+00 : f32
    %56 = vector.broadcast %cst_49 : f32 to vector<16x128xf32>
    %57 = arith.maximumf %55, %56 : vector<16x128xf32>
    %c3_50 = arith.constant 3 : index
    %c0_51 = arith.constant 0 : index
    %c0_52 = arith.constant 0 : index
    %58 = vector.load %arg4[%c3_50, %c0_51, %c0_52] : memref<4x128x128xf32, #tpu.memory_space<vmem>>, vector<1x128x128xf32>
    %59 = vector.shape_cast %58 : vector<1x128x128xf32> to vector<128x128xf32>
    %cst_53 = arith.constant dense<0.000000e+00> : vector<16x128xf32>
    %60 = tpu.matmul %57, %59, %cst_53 {dimension_numbers = #tpu.dot_dimension_numbers<[1], [0], [0], [1], [0, 0, 1, 1], [], []>} : vector<16x128xf32>, vector<128x128xf32>, vector<16x128xf32> -> vector<16x128xf32>
    %c3_54 = arith.constant 3 : index
    %c0_55 = arith.constant 0 : index
    %c0_56 = arith.constant 0 : index
    %61 = vector.load %arg5[%c3_54, %c0_55, %c0_56] : memref<4x1x128xf32, #tpu.memory_space<vmem>>, vector<1x1x128xf32>
    %62 = vector.shape_cast %61 : vector<1x1x128xf32> to vector<1x128xf32>
    %63 = vector.broadcast %62 : vector<1x128xf32> to vector<16x128xf32>
    %64 = arith.addf %60, %63 : vector<16x128xf32>
    %cst_57 = arith.constant 0.000000e+00 : f32
    %65 = vector.broadcast %cst_57 : f32 to vector<16x128xf32>
    %66 = arith.subf %65, %64 : vector<16x128xf32>
    %67 = math.exp %66 : vector<16x128xf32>
    %cst_58 = arith.constant 1.000000e+00 : f32
    %68 = vector.broadcast %cst_58 : f32 to vector<16x128xf32>
    %69 = arith.addf %68, %67 : vector<16x128xf32>
    %70 = tpu.reciprocal %69 : vector<16x128xf32> -> vector<16x128xf32>
    %c0_59 = arith.constant 0 : index
    %c0_60 = arith.constant 0 : index
    %71 = vector.load %arg6[%c0_59, %c0_60] : memref<16x128xf32, #tpu.memory_space<vmem>>, vector<16x128xf32>
    tpu.vector_store %arg6[%c0_59, %c0_60], %70 {strides = array<i32>} : memref<16x128xf32, #tpu.memory_space<vmem>>, vector<16x128xf32>,
    return
  }
  func.func @transform_0(%arg0: i32) -> (i32, i32) {
    %c0_i32 = arith.constant 0 : i32
    %c0_i32_0 = arith.constant 0 : i32
    return %arg0, %c0_i32 : i32, i32
  }
  func.func @transform_1(%arg0: i32) -> (i32, i32, i32) {
    %c0_i32 = arith.constant 0 : i32
    %c0_i32_0 = arith.constant 0 : i32
    %c0_i32_1 = arith.constant 0 : i32
    %c0_i32_2 = arith.constant 0 : i32
    return %c0_i32, %c0_i32_0, %c0_i32_1 : i32, i32, i32
  }
  func.func @transform_2(%arg0: i32) -> (i32, i32, i32) {
    %c0_i32 = arith.constant 0 : i32
    %c0_i32_0 = arith.constant 0 : i32
    %c0_i32_1 = arith.constant 0 : i32
    %c0_i32_2 = arith.constant 0 : i32
    return %c0_i32, %c0_i32_0, %c0_i32_1 : i32, i32, i32
  }
  func.func @transform_3(%arg0: i32) -> (i32, i32, i32) {
    %c0_i32 = arith.constant 0 : i32
    %c0_i32_0 = arith.constant 0 : i32
    %c0_i32_1 = arith.constant 0 : i32
    %c0_i32_2 = arith.constant 0 : i32
    return %c0_i32, %c0_i32_0, %c0_i32_1 : i32, i32, i32
  }
  func.func @transform_4(%arg0: i32) -> (i32, i32, i32) {
    %c0_i32 = arith.constant 0 : i32
    %c0_i32_0 = arith.constant 0 : i32
    %c0_i32_1 = arith.constant 0 : i32
    %c0_i32_2 = arith.constant 0 : i32
    return %c0_i32, %c0_i32_0, %c0_i32_1 : i32, i32, i32
  }
  func.func @transform_5(%arg0: i32) -> (i32, i32) {
    %c0_i32 = arith.constant 0 : i32
    %c0_i32_0 = arith.constant 0 : i32
    return %arg0, %c0_i32 : i32, i32
  }
}

</mosaic_0001>

<bundles_post_ra>
// kernel: tpu_custom_call.1
= control target key start
LH: loop header
LB: loop body
LE: loop exit
PB: predicated region body
PF: predicated region fallthrough
CT: control target
= control target key end

     0   :  { %10 = vsyncpa [#allocation3], 0  ;;  %s772_s0 = inlined_call_operand.hbm [shape: f32[16,128], index: 0, kind: input, shape index: {}]   ;;  %s773_s1 = inlined_call_operand.hbm [shape: f32[4,128,128], index: 1, kind: input, shape index: {}]   ;;  %s774_s2 = inlined_call_operand.hbm [shape: f32[4,1,128], index: 2, kind: input, shape index: {}]   ;;  %s775_s3 = inlined_call_operand.hbm [shape: f32[4,128,128], index: 3, kind: input, shape index: {}]   ;;  %s776_s4 = inlined_call_operand.hbm [shape: f32[4,1,128], index: 4, kind: input, shape index: {}]   ;;  %s777_s5 = inlined_call_operand.hbm [shape: f32[16,128], index: 5, kind: output, shape index: {}]  }
   0x1   :  { %11 = vsyncpa [#allocation6], 0 }
   0x2   :  { %12 = vsyncpa [#allocation9], 0 }
   0x3   :  { %13 = vsyncpa [#allocation4], 0  ;;  %s31_s20 = sshll.u32 %s773_s1, 4  ;;  %s702_s21 = smov [#allocation5]   ;;  %s32_s20 = int_to_ptr.hbm [resolvable:$true] %s31_s20 }
   0x4   :  { %s33_s22 = sshll.u32 %s702_s21, 4  ;;  %s57_s25 = sshll.u32 %s775_s3, 4  ;;  %s34_s22 = int_to_ptr.vmem [resolvable:$true] %s33_s22  ;;  %s58_s25 = int_to_ptr.hbm [resolvable:$true] %s57_s25 }
   0x5   :  { %s703_s26 = smov 128   ;;  %s704_s27 = smov 8  }
   0x6   :  { %39 = dma.hbm_to_vmem [thread:$0]  %s32_s20, 8192, %s34_s22, [#allocation6], %s703_s26, %s703_s26, %s704_s27  }
   0x7   :  { %s705_s28 = smov [#allocation8]   ;;  %s18_s1 = sshll.u32 %s772_s0, 4  ;;  %s19_s1 = int_to_ptr.hbm [resolvable:$true] %s18_s1 }
   0x8   :  { %s59_s29 = sshll.u32 %s705_s28, 4  ;;  %s44_s8 = sshll.u32 %s774_s2, 4  ;;  %s60_s29 = int_to_ptr.vmem [resolvable:$true] %s59_s29  ;;  %s45_s8 = int_to_ptr.hbm [resolvable:$true] %s44_s8 }
   0x9   :  { %65 = dma.hbm_to_vmem [thread:$0]  %s58_s25, 8192, %s60_s29, [#allocation9], %s703_s26, %s703_s26, %s704_s27  }
   0xa   :  { %s706_s9 = smov [#allocation2]   ;;  %s707_s11 = smov [#allocation7]  }
   0xb   :  { %s20_s10 = sshll.u32 %s706_s9, 4  ;;  %s46_s0 = sshll.u32 %s707_s11, 4  ;;  %s21_s10 = int_to_ptr.vmem [resolvable:$true] %s20_s10  ;;  %s47_s0 = int_to_ptr.vmem [resolvable:$true] %s46_s0 }
   0xc   :  { %26 = dma.hbm_to_vmem [thread:$0]  %s19_s1, 256, %s21_s10, [#allocation3], %s703_s26, %s703_s26, %s704_s27  }
   0xd   :  { %s708_s12 = smov 16   ;;  %s709_s13 = smov 1  }
   0xe   :  { %52 = dma.hbm_to_vmem [thread:$0]  %s45_s8, 64, %s47_s0, [#allocation6], %s708_s12, %s708_s12, %s709_s13  }
   0xf   :  { %s70_s16 = sshll.u32 %s776_s4, 4  ;;  %s710_s2 = smov [#allocation10]   ;;  %s71_s16 = int_to_ptr.hbm [resolvable:$true] %s70_s16 }
  0x10   :  { %s72_s17 = sshll.u32 %s710_s2, 4  ;;  %s73_s17 = int_to_ptr.vmem [resolvable:$true] %s72_s17 }
  0x11   :  { %78 = dma.hbm_to_vmem [thread:$0]  %s71_s16, 64, %s73_s17, [#allocation9], %s708_s12, %s708_s12, %s709_s13  }
  0x12   :  { %694 = dma.done.wait [#allocation3], 256  }
  0x13   :  { %695 = vsyncadd [#allocation3], 4294967040 }
  0x14   :  { %696 = dma.done.wait [#allocation6], 8256  }
  0x15   :  { %697 = vsyncadd [#allocation6], 4294959040 }
  0x16   :  { %698 = dma.done.wait [#allocation9], 8256  }
  0x17   :  { %699 = vsyncadd [#allocation9], 4294959040  ;;  %v116_v0 = vld [vmem:[#allocation5 + $0x78] sm:$0xff]  ;;  %v115_v1 = vld [vmem:[#allocation5 + $0x70] sm:$0xff]  ;;  %s711_s4 = smov [#allocation11]   ;;  %s509_s21 = sshll.u32 %s777_s5, 4  ;;  %s510_s21 = int_to_ptr.hbm [resolvable:$true] %s509_s21 }
  0x18   :  { %121 = vmatpush.msra.mxu0 %v116_v0  ;;  %v114_v2 = vld [vmem:[#allocation5 + $0x68] sm:$0xff]  ;;  %v113_v3 = vld [vmem:[#allocation5 + $0x60] sm:$0xff]  ;;  %v112_v4 = vld [vmem:[#allocation5 + $0x58] sm:$0xff]  ;;  %s507_s18 = sshll.u32 %s711_s4, 4  ;;  %s508_s18 = int_to_ptr.vmem [resolvable:$true] %s507_s18 }
  0x19   :  { %v111_v5 = vld [vmem:[#allocation5 + $0x50] sm:$0xff]  ;;  %v161_v6 = vld [vmem:[#allocation8 + $0x78] sm:$0xff]  ;;  %v110_v8 = vld [vmem:[#allocation5 + $0x48] sm:$0xff] }
  0x1a   :  { %122 = vmatpush.msra.mxu0 %v115_v1  ;;  %v160_v7 = vld [vmem:[#allocation8 + $0x70] sm:$0xff]  ;;  %166 = vmatpush.msra.mxu1 %v161_v6  ;;  %v159_v9 = vld [vmem:[#allocation8 + $0x68] sm:$0xff]  ;;  %v109_v10 = vld [vmem:[#allocation5 + $0x40] sm:$0xff] }
  0x1b   :  { %v158_v11 = vld [vmem:[#allocation8 + $0x60] sm:$0xff]  ;;  %v108_v12 = vld [vmem:[#allocation5 + $0x38] sm:$0xff]  ;;  %v107_v14 = vld [vmem:[#allocation5 + $0x30] sm:$0xff] }
  0x1c   :  { %123 = vmatpush.msra.mxu0 %v114_v2  ;;  %167 = vmatpush.msra.mxu1 %v160_v7  ;;  %v157_v13 = vld [vmem:[#allocation8 + $0x58] sm:$0xff]  ;;  %v156_v15 = vld [vmem:[#allocation8 + $0x50] sm:$0xff]  ;;  %v106_v16 = vld [vmem:[#allocation5 + $0x28] sm:$0xff] }
  0x1d   :  { %v155_v17 = vld [vmem:[#allocation8 + $0x48] sm:$0xff]  ;;  %v105_v18 = vld [vmem:[#allocation5 + $0x20] sm:$0xff]  ;;  %v104_v20 = vld [vmem:[#allocation5 + $0x18] sm:$0xff] }
  0x1e   :  { %124 = vmatpush.msra.mxu0 %v113_v3  ;;  %168 = vmatpush.msra.mxu1 %v159_v9  ;;  %v154_v19 = vld [vmem:[#allocation8 + $0x40] sm:$0xff]  ;;  %v153_v21 = vld [vmem:[#allocation8 + $0x38] sm:$0xff]  ;;  %v103_v22 = vld [vmem:[#allocation5 + $0x10] sm:$0xff] }
  0x1f   :  { %v152_v23 = vld [vmem:[#allocation8 + $0x30] sm:$0xff]  ;;  %v102_v24 = vld [vmem:[#allocation5 + $0x8] sm:$0xff]  ;;  %v101_v26 = vld [vmem:[#allocation5] sm:$0xff] }
  0x20   :  { %125 = vmatpush.msra.mxu0 %v112_v4  ;;  %169 = vmatpush.msra.mxu1 %v158_v11  ;;  %v151_v25 = vld [vmem:[#allocation8 + $0x28] sm:$0xff]  ;;  %v150_v27 = vld [vmem:[#allocation8 + $0x20] sm:$0xff]  ;;  %v149_v29 = vld [vmem:[#allocation8 + $0x18] sm:$0xff] }
  0x21   :  { %v99_v28 = vld [vmem:[#allocation2] sm:$0xff]  ;;  %v100_v30 = vld [vmem:[#allocation2 + $0x8] sm:$0xff]  ;;  %v146_v33 = vld [vmem:[#allocation8] sm:$0xff] }
  0x22   :  { %126 = vmatpush.msra.mxu0 %v111_v5  ;;  %170 = vmatpush.msra.mxu1 %v157_v13  ;;  %v148_v31 = vld [vmem:[#allocation8 + $0x10] sm:$0xff]  ;;  %v147_v32 = vld [vmem:[#allocation8 + $0x8] sm:$0xff]  ;;  %v202_v37 = vld [vmem:[#allocation5 + $0xe0] sm:$0xff] }
  0x23   :  { %v205_v34 = vld [vmem:[#allocation5 + $0xf8] sm:$0xff]  ;;  %v204_v35 = vld [vmem:[#allocation5 + $0xf0] sm:$0xff]  ;;  %v203_v36 = vld [vmem:[#allocation5 + $0xe8] sm:$0xff] }
  0x24   :  { %127 = vmatpush.msra.mxu0 %v110_v8  ;;  %171 = vmatpush.msra.mxu1 %v156_v15  ;;  %v201_v38 = vld [vmem:[#allocation5 + $0xd8] sm:$0xff]  ;;  %v200_v39 = vld [vmem:[#allocation5 + $0xd0] sm:$0xff]  ;;  %v199_v40 = vld [vmem:[#allocation5 + $0xc8] sm:$0xff] }
  0x25   :  { %211 = vmatpush.msra.mxu2 %v205_v34  ;;  %v198_v41 = vld [vmem:[#allocation5 + $0xc0] sm:$0xff]  ;;  %v197_v42 = vld [vmem:[#allocation5 + $0xb8] sm:$0xff]  ;;  %v196_v44 = vld [vmem:[#allocation5 + $0xb0] sm:$0xff] }
  0x26   :  { %128 = vmatpush.msra.mxu0 %v109_v10  ;;  %172 = vmatpush.msra.mxu1 %v155_v17  ;;  %v534_v43 = vld [vmem:[#allocation7] ss:$0 sm:$0xff]  ;;  %v195_v45 = vld [vmem:[#allocation5 + $0xa8] sm:$0xff]  ;;  %v193_v50 = vld [vmem:[#allocation5 + $0x98] sm:$0xff] }
  0x27   :  { %212 = vmatpush.msra.mxu2 %v204_v35  ;;  %v194_v48 = vld [vmem:[#allocation5 + $0xa0] sm:$0xff]  ;;  %v192_v51 = vld [vmem:[#allocation5 + $0x90] sm:$0xff]  ;;  %v191_v55 = vld [vmem:[#allocation5 + $0x88] sm:$0xff] }
  0x28   :  { %129 = vmatpush.msra.mxu0 %v108_v12  ;;  %173 = vmatpush.msra.mxu1 %v154_v19  ;;  %v190_v56 = vld [vmem:[#allocation5 + $0x80] sm:$0xff]  ;;  %v251_v58 = vld [vmem:[#allocation8 + $0xf0] sm:$0xff]  ;;  %v250_v59 = vld [vmem:[#allocation8 + $0xe8] sm:$0xff] }
  0x29   :  { %213 = vmatpush.msra.mxu2 %v203_v36  ;;  %v252_v57 = vld [vmem:[#allocation8 + $0xf8] sm:$0xff]  ;;  %v249_v60 = vld [vmem:[#allocation8 + $0xe0] sm:$0xff]  ;;  %v247_v62 = vld [vmem:[#allocation8 + $0xd0] sm:$0xff] }
  0x2a   :  { %130 = vmatpush.msra.mxu0 %v107_v14  ;;  %174 = vmatpush.msra.mxu1 %v153_v21  ;;  %v248_v61 = vld [vmem:[#allocation8 + $0xd8] sm:$0xff]  ;;  %v246_v63 = vld [vmem:[#allocation8 + $0xc8] sm:$0xff]  ;;  %v245_v0 = vld [vmem:[#allocation8 + $0xc0] sm:$0xff] }
  0x2b   :  { %214 = vmatpush.msra.mxu2 %v202_v37  ;;  %258 = vmatpush.msra.mxu3 %v252_v57  ;;  %v244_v1 = vld [vmem:[#allocation8 + $0xb8] sm:$0xff]  ;;  %v243_v2 = vld [vmem:[#allocation8 + $0xb0] sm:$0xff]  ;;  %v535_v3 = vld [vmem:[#allocation10] ss:$0 sm:$0xff] }
  0x2c   :  { %131 = vmatpush.msra.mxu0 %v106_v16  ;;  %175 = vmatpush.msra.mxu1 %v152_v23  ;;  %v242_v4 = vld [vmem:[#allocation8 + $0xa8] sm:$0xff]  ;;  %v241_v5 = vld [vmem:[#allocation8 + $0xa0] sm:$0xff]  ;;  %v240_v8 = vld [vmem:[#allocation8 + $0x98] sm:$0xff] }
  0x2d   :  { %215 = vmatpush.msra.mxu2 %v201_v38  ;;  %259 = vmatpush.msra.mxu3 %v251_v58  ;;  %v239_v11 = vld [vmem:[#allocation8 + $0x90] sm:$0xff]  ;;  %v238_v12 = vld [vmem:[#allocation8 + $0x88] sm:$0xff]  ;;  %v237_v13 = vld [vmem:[#allocation8 + $0x80] sm:$0xff] }
  0x2e   :  { %132 = vmatpush.msra.mxu0 %v105_v18  ;;  %176 = vmatpush.msra.mxu1 %v151_v25  ;;  %v297_v14 = vld [vmem:[#allocation5 + $0x178] sm:$0xff]  ;;  %v296_v15 = vld [vmem:[#allocation5 + $0x170] sm:$0xff]  ;;  %v295_v16 = vld [vmem:[#allocation5 + $0x168] sm:$0xff] }
  0x2f   :  { %216 = vmatpush.msra.mxu2 %v200_v39  ;;  %260 = vmatpush.msra.mxu3 %v250_v59  ;;  %v294_v17 = vld [vmem:[#allocation5 + $0x160] sm:$0xff]  ;;  %v293_v18 = vld [vmem:[#allocation5 + $0x158] sm:$0xff]  ;;  %v292_v19 = vld [vmem:[#allocation5 + $0x150] sm:$0xff] }
  0x30   :  { %133 = vmatpush.msra.mxu0 %v104_v20  ;;  %177 = vmatpush.msra.mxu1 %v150_v27  ;;  %v291_v20 = vld [vmem:[#allocation5 + $0x148] sm:$0xff]  ;;  %v290_v21 = vld [vmem:[#allocation5 + $0x140] sm:$0xff]  ;;  %v343_v38 = vld [vmem:[#allocation8 + $0x170] sm:$0xff] }
  0x31   :  { %217 = vmatpush.msra.mxu2 %v199_v40  ;;  %261 = vmatpush.msra.mxu3 %v249_v60  ;;  %v536_v23 = vld [vmem:[#allocation7 + $0x1] ss:$0 sm:$0xff]  ;;  %v287_v25 = vld [vmem:[#allocation5 + $0x128] sm:$0xff]  ;;  %v389_v58 = vld [vmem:[#allocation5 + $0x1f8] sm:$0xff] }
  0x32   :  { %134 = vmatpush.msra.mxu0 %v103_v22  ;;  %178 = vmatpush.msra.mxu1 %v149_v29  ;;  %v289_v22 = vld [vmem:[#allocation5 + $0x138] sm:$0xff]  ;;  %v283_v35 = vld [vmem:[#allocation5 + $0x108] sm:$0xff]  ;;  %v282_v36 = vld [vmem:[#allocation5 + $0x100] sm:$0xff] }
  0x33   :  { %218 = vmatpush.msra.mxu2 %v198_v41  ;;  %262 = vmatpush.msra.mxu3 %v248_v61  ;;  %v344_v37 = vld [vmem:[#allocation8 + $0x178] sm:$0xff]  ;;  %v342_v39 = vld [vmem:[#allocation8 + $0x168] sm:$0xff]  ;;  %v341_v40 = vld [vmem:[#allocation8 + $0x160] sm:$0xff] }
  0x34   :  { %135 = vmatpush.msra.mxu0 %v102_v24  ;;  %179 = vmatpush.msra.mxu1 %v148_v31  ;;  %v288_v24 = vld [vmem:[#allocation5 + $0x130] sm:$0xff]  ;;  %v340_v41 = vld [vmem:[#allocation8 + $0x158] sm:$0xff]  ;;  %v329_v57 = vld [vmem:[#allocation8 + $0x100] sm:$0xff] }
  0x35   :  { %219 = vmatpush.msra.mxu2 %v197_v42  ;;  %263 = vmatpush.msra.mxu3 %v247_v62  ;;  %v284_v31 = vld [vmem:[#allocation5 + $0x110] sm:$0xff]  ;;  %v387_v60 = vld [vmem:[#allocation5 + $0x1e8] sm:$0xff]  ;;  %v386_v61 = vld [vmem:[#allocation5 + $0x1e0] sm:$0xff] }
  0x36   :  { %136 = vmatpush.msra.mxu0 %v101_v26  ;;  %180 = vmatpush.msra.mxu1 %v147_v32  ;;  %v339_v42 = vld [vmem:[#allocation8 + $0x150] sm:$0xff] }
  0x37   :  { %137 = vmatmul.f32.vlgmr.msra.gmra.mxu0 %v99_v28  ;;  %220 = vmatpush.msra.mxu2 %v196_v44  ;;  %v286_v28 = vld [vmem:[#allocation5 + $0x120] sm:$0xff]  ;;  %v388_v59 = vld [vmem:[#allocation5 + $0x1f0] sm:$0xff]  ;;  %v385_v62 = vld [vmem:[#allocation5 + $0x1d8] sm:$0xff] }
  0x38   :  { %181 = vmatpush.msra.mxu1 %v146_v33  ;;  %264 = vmatpush.msra.mxu3 %v246_v63  ;;  %v337_v44 = vld [vmem:[#allocation8 + $0x140] sm:$0xff]  ;;  %v384_v63 = vld [vmem:[#allocation5 + $0x1d0] sm:$0xff] }
  0x39   :  { %221 = vmatpush.msra.mxu2 %v195_v45  ;;  %303 = vmatpush.msrb.mxu0 %v297_v14  ;;  %v336_v45 = vld [vmem:[#allocation8 + $0x138] sm:$0xff] }
  0x3a   :  { %265 = vmatpush.msra.mxu3 %v245_v0  ;;  %350 = vmatpush.msrb.mxu1 %v344_v37  ;;  %v383_v0 = vld [vmem:[#allocation5 + $0x1c8] sm:$0xff] }
  0x3b   :  { %222 = vmatpush.msra.mxu2 %v194_v48  ;;  %304 = vmatpush.msrb.mxu0 %v296_v15  ;;  %v334_v48 = vld [vmem:[#allocation8 + $0x128] sm:$0xff]  ;;  %v421_v37 = vld [vmem:[#allocation8 + $0x180] sm:$0xff] }
  0x3c   :  { %266 = vmatpush.msra.mxu3 %v244_v1  ;;  %351 = vmatpush.msrb.mxu1 %v343_v38  ;;  %v382_v1 = vld [vmem:[#allocation5 + $0x1c0] sm:$0xff]  ;;  %v375_v15 = vld [vmem:[#allocation5 + $0x188] sm:$0xff] }
  0x3d   :  { %223 = vmatpush.msra.mxu2 %v193_v50  ;;  %305 = vmatpush.msrb.mxu0 %v295_v16  ;;  %v374_v16 = vld [vmem:[#allocation5 + $0x180] sm:$0xff] }
  0x3e   :  { %267 = vmatpush.msra.mxu3 %v243_v2  ;;  %352 = vmatpush.msrb.mxu1 %v342_v39  ;;  %v381_v2 = vld [vmem:[#allocation5 + $0x1b8] sm:$0xff]  ;;  %v540_v38 = vld [vmem:[#allocation7 + $0x3] ss:$0 sm:$0xff] }
  0x3f   :  { %140 = vmatmul.f32.gmra.mxu0 %v100_v30  ;;  %224 = vmatpush.msra.mxu2 %v192_v51  ;;  %v285_v30 = vld [vmem:[#allocation5 + $0x118] sm:$0xff] }
  0x40   :  { %268 = vmatpush.msra.mxu3 %v242_v4  ;;  %306 = vmatpush.msrb.mxu0 %v294_v17  ;;  %v380_v4 = vld [vmem:[#allocation5 + $0x1b0] sm:$0xff]  ;;  %v436_v17 = vld [vmem:[#allocation8 + $0x1f8] sm:$0xff] }
  0x41   :  { %225 = vmatpush.msra.mxu2 %v191_v55  ;;  %353 = vmatpush.msrb.mxu1 %v341_v40  ;;  %v331_v55 = vld [vmem:[#allocation8 + $0x110] sm:$0xff] }
  0x42   :  { %269 = vmatpush.msra.mxu3 %v241_v5  ;;  %307 = vmatpush.msrb.mxu0 %v293_v18  ;;  %v379_v5 = vld [vmem:[#allocation5 + $0x1a8] sm:$0xff]  ;;  %v435_v18 = vld [vmem:[#allocation8 + $0x1f0] sm:$0xff] }
  0x43   :  { %226 = vmatpush.msra.mxu2 %v190_v56  ;;  %354 = vmatpush.msrb.mxu1 %v340_v41  ;;  %v330_v56 = vld [vmem:[#allocation8 + $0x108] sm:$0xff] }
  0x44   :  { %270 = vmatpush.msra.mxu3 %v240_v8  ;;  %308 = vmatpush.msrb.mxu0 %v292_v19  ;;  %v378_v8 = vld [vmem:[#allocation5 + $0x1a0] sm:$0xff]  ;;  %v434_v19 = vld [vmem:[#allocation8 + $0x1e8] sm:$0xff] }
  0x45   :  { %355 = vmatpush.msrb.mxu1 %v339_v42  ;;  %395 = vmatpush.msrb.mxu2 %v389_v58 }
  0x46   :  { %271 = vmatpush.msra.mxu3 %v239_v11  ;;  %309 = vmatpush.msrb.mxu0 %v291_v20  ;;  %v376_v11 = vld [vmem:[#allocation5 + $0x190] sm:$0xff]  ;;  %v433_v20 = vld [vmem:[#allocation8 + $0x1e0] sm:$0xff] }
  0x47   :  { %396 = vmatpush.msrb.mxu2 %v388_v59 }
  0x48   :  { %272 = vmatpush.msra.mxu3 %v238_v12  ;;  %310 = vmatpush.msrb.mxu0 %v290_v21  ;;  %v432_v21 = vld [vmem:[#allocation8 + $0x1d8] sm:$0xff] }
  0x49   :  { %397 = vmatpush.msrb.mxu2 %v387_v60 }
  0x4a   :  { %273 = vmatpush.msra.mxu3 %v237_v13  ;;  %311 = vmatpush.msrb.mxu0 %v289_v22  ;;  %v431_v22 = vld [vmem:[#allocation8 + $0x1d0] sm:$0xff] }
  0x4b   :  { %398 = vmatpush.msrb.mxu2 %v386_v61 }
  0x4c   :  { %312 = vmatpush.msrb.mxu0 %v288_v24  ;;  %442 = vmatpush.msrb.mxu3 %v436_v17  ;;  %v429_v24 = vld [vmem:[#allocation8 + $0x1c0] sm:$0xff] }
  0x4d   :  { %399 = vmatpush.msrb.mxu2 %v385_v62 }
  0x4e   :  { %313 = vmatpush.msrb.mxu0 %v287_v25  ;;  %443 = vmatpush.msrb.mxu3 %v435_v18  ;;  %v428_v25 = vld [vmem:[#allocation8 + $0x1b8] sm:$0xff] }
  0x4f   :  { %400 = vmatpush.msrb.mxu2 %v384_v63 }
  0x50   :  { %314 = vmatpush.msrb.mxu0 %v286_v28  ;;  %444 = vmatpush.msrb.mxu3 %v434_v19  ;;  %v426_v28 = vld [vmem:[#allocation8 + $0x1a8] sm:$0xff] }
  0x51   :  { %401 = vmatpush.msrb.mxu2 %v383_v0 }
  0x52   :  { %315 = vmatpush.msrb.mxu0 %v285_v30  ;;  %445 = vmatpush.msrb.mxu3 %v433_v20 }
  0x53   :  { %402 = vmatpush.msrb.mxu2 %v382_v1 }
  0x54   :  { %316 = vmatpush.msrb.mxu0 %v284_v31  ;;  %446 = vmatpush.msrb.mxu3 %v432_v21 }
  0x55   :  { %403 = vmatpush.msrb.mxu2 %v381_v2 }
  0x56   :  { %317 = vmatpush.msrb.mxu0 %v283_v35  ;;  %447 = vmatpush.msrb.mxu3 %v431_v22  ;;  %v423_v35 = vld [vmem:[#allocation8 + $0x190] sm:$0xff] }
  0x57   :  { %404 = vmatpush.msrb.mxu2 %v380_v4 }
  0x58   :  { %318 = vmatpush.msrb.mxu0 %v282_v36  ;;  %v422_v36 = vld [vmem:[#allocation8 + $0x188] sm:$0xff] }
  0x59   :  { %405 = vmatpush.msrb.mxu2 %v379_v5 }
  0x5b   :  { %406 = vmatpush.msrb.mxu2 %v378_v8 }
  0xb4   :  { %v138_v46 = vpop.f32.mrf.mxu0 }
  0xb5   :  { %v139_v47 = vadd.f32 %v534_v43, %v138_v46  ;;  %v335_v46 = vld [vmem:[#allocation8 + $0x130] sm:$0xff] }
  0xb7   :  { %v144_v49 = vmax.f32 %v139_v47, 0.0  ;;  %v537_v47 = vld [vmem:[#allocation10 + $0x1] ss:$0 sm:$0xff] }
  0xb9   :  { %182 = vmatmul.f32.vlgmr.msra.gmra.mxu1 %v144_v49  ;;  %v333_v49 = vld [vmem:[#allocation8 + $0x120] sm:$0xff] }
  0xbc   :  { %v141_v52 = vpop.f32.mrf.mxu0 }
  0xbd   :  { %v142_v53 = vadd.f32 %v534_v43, %v141_v52  ;;  %v338_v43 = vld [vmem:[#allocation8 + $0x148] sm:$0xff]  ;;  %v332_v52 = vld [vmem:[#allocation8 + $0x118] sm:$0xff] }
  0xbe   :  { %356 = vmatpush.msrb.mxu1 %v338_v43 }
  0xbf   :  { %v145_v54 = vmax.f32 %v142_v53, 0.0 }
  0xc0   :  { %357 = vmatpush.msrb.mxu1 %v337_v44 }
  0xc1   :  { %185 = vmatmul.f32.gmra.mxu1 %v145_v54 }
  0xc2   :  { %358 = vmatpush.msrb.mxu1 %v336_v45  ;;  %v541_v45 = vld [vmem:[#allocation10 + $0x3] ss:$0 sm:$0xff] }
  0xc4   :  { %359 = vmatpush.msrb.mxu1 %v335_v46 }
  0xc6   :  { %360 = vmatpush.msrb.mxu1 %v334_v48 }
  0xc8   :  { %361 = vmatpush.msrb.mxu1 %v333_v49 }
  0xca   :  { %362 = vmatpush.msrb.mxu1 %v332_v52 }
  0xcc   :  { %363 = vmatpush.msrb.mxu1 %v331_v55 }
  0xce   :  { %364 = vmatpush.msrb.mxu1 %v330_v56 }
  0xd0   :  { %365 = vmatpush.msrb.mxu1 %v329_v57 }
 0x136   :  { %v183_v6 = vpop.f32.mrf.mxu1 }
 0x137   :  { %v184_v7 = vadd.f32 %v535_v3, %v183_v6 }
 0x139   :  { %227 = vmatmul.f32.vlgmr.msra.gmra.mxu2 %v184_v7 }
 0x13e   :  { %v186_v9 = vpop.f32.mrf.mxu1 }
 0x13f   :  { %v187_v10 = vadd.f32 %v535_v3, %v186_v9  ;;  %v538_v3 = vld [vmem:[#allocation7 + $0x2] ss:$0 sm:$0xff] }
 0x141   :  { %230 = vmatmul.f32.gmra.mxu2 %v187_v10  ;;  %v377_v10 = vld [vmem:[#allocation5 + $0x198] sm:$0xff] }
 0x142   :  { %407 = vmatpush.msrb.mxu2 %v377_v10 }
 0x144   :  { %408 = vmatpush.msrb.mxu2 %v376_v11 }
 0x146   :  { %409 = vmatpush.msrb.mxu2 %v375_v15 }
 0x148   :  { %410 = vmatpush.msrb.mxu2 %v374_v16 }
 0x1bc   :  { %v228_v26 = vpop.f32.mrf.mxu2 }
 0x1bd   :  { %v229_v27 = vadd.f32 %v536_v23, %v228_v26  ;;  %v427_v26 = vld [vmem:[#allocation8 + $0x1b0] sm:$0xff] }
 0x1bf   :  { %v234_v29 = vmax.f32 %v229_v27, 0.0  ;;  %v539_v27 = vld [vmem:[#allocation10 + $0x2] ss:$0 sm:$0xff] }
 0x1c1   :  { %274 = vmatmul.f32.vlgmr.msra.gmra.mxu3 %v234_v29  ;;  %v425_v29 = vld [vmem:[#allocation8 + $0x1a0] sm:$0xff] }
 0x1c4   :  { %v231_v32 = vpop.f32.mrf.mxu2 }
 0x1c5   :  { %v232_v33 = vadd.f32 %v536_v23, %v231_v32  ;;  %v430_v23 = vld [vmem:[#allocation8 + $0x1c8] sm:$0xff]  ;;  %v424_v32 = vld [vmem:[#allocation8 + $0x198] sm:$0xff] }
 0x1c6   :  { %448 = vmatpush.msrb.mxu3 %v430_v23 }
 0x1c7   :  { %v235_v34 = vmax.f32 %v232_v33, 0.0 }
 0x1c8   :  { %449 = vmatpush.msrb.mxu3 %v429_v24 }
 0x1c9   :  { %277 = vmatmul.f32.gmra.mxu3 %v235_v34 }
 0x1ca   :  { %450 = vmatpush.msrb.mxu3 %v428_v25 }
 0x1cc   :  { %451 = vmatpush.msrb.mxu3 %v427_v26 }
 0x1ce   :  { %452 = vmatpush.msrb.mxu3 %v426_v28 }
 0x1d0   :  { %453 = vmatpush.msrb.mxu3 %v425_v29 }
 0x1d2   :  { %454 = vmatpush.msrb.mxu3 %v424_v32 }
 0x1d4   :  { %455 = vmatpush.msrb.mxu3 %v423_v35 }
 0x1d6   :  { %456 = vmatpush.msrb.mxu3 %v422_v36 }
 0x1d8   :  { %457 = vmatpush.msrb.mxu3 %v421_v37 }
 0x244   :  { %v275_v50 = vpop.f32.mrf.mxu3 }
 0x245   :  { %v276_v51 = vadd.f32 %v537_v47, %v275_v50 }
 0x247   :  { %319 = vmatmul.f32.vlgmr.msrb.gmra.mxu0 %v276_v51 }
 0x24c   :  { %v278_v53 = vpop.f32.mrf.mxu3 }
 0x24d   :  { %v279_v54 = vadd.f32 %v537_v47, %v278_v53 }
 0x24f   :  { %322 = vmatmul.f32.gmra.mxu0 %v279_v54 }
 0x2c4   :  { %v320_v6 = vpop.f32.mrf.mxu0 }
 0x2c5   :  { %v321_v7 = vadd.f32 %v538_v3, %v320_v6 }
 0x2c7   :  { %v326_v9 = vmax.f32 %v321_v7, 0.0 }
 0x2c9   :  { %366 = vmatmul.f32.vlgmr.msrb.gmra.mxu1 %v326_v9 }
 0x2cc   :  { %v323_v12 = vpop.f32.mrf.mxu0 }
 0x2cd   :  { %v324_v13 = vadd.f32 %v538_v3, %v323_v12 }
 0x2cf   :  { %v327_v14 = vmax.f32 %v324_v13, 0.0 }
 0x2d1   :  { %369 = vmatmul.f32.gmra.mxu1 %v327_v14 }
 0x346   :  { %v367_v30 = vpop.f32.mrf.mxu1 }
 0x347   :  { %v368_v31 = vadd.f32 %v539_v27, %v367_v30 }
 0x349   :  { %411 = vmatmul.f32.vlgmr.msrb.gmra.mxu2 %v368_v31 }
 0x34e   :  { %v370_v33 = vpop.f32.mrf.mxu1 }
 0x34f   :  { %v371_v34 = vadd.f32 %v539_v27, %v370_v33 }
 0x351   :  { %414 = vmatmul.f32.gmra.mxu2 %v371_v34 }
 0x3cc   :  { %v412_v39 = vpop.f32.mrf.mxu2 }
 0x3cd   :  { %v413_v40 = vadd.f32 %v540_v38, %v412_v39 }
 0x3cf   :  { %v418_v41 = vmax.f32 %v413_v40, 0.0 }
 0x3d1   :  { %458 = vmatmul.f32.vlgmr.msrb.gmra.mxu3 %v418_v41 }
 0x3d4   :  { %v415_v42 = vpop.f32.mrf.mxu2 }
 0x3d5   :  { %v416_v43 = vadd.f32 %v540_v38, %v415_v42 }
 0x3d7   :  { %v419_v44 = vmax.f32 %v416_v43, 0.0 }
 0x3d9   :  { %461 = vmatmul.f32.gmra.mxu3 %v419_v44 }
 0x454   :  { %v459_v46 = vpop.f32.mrf.mxu3 }
 0x455   :  { %v460_v47 = vadd.f32 %v541_v45, %v459_v46 }
 0x457   :  { %v465_v48 = vsub.f32 0.0, %v460_v47 }
 0x459   :  { %v467_v49 = vmul.f32 1.442695, %v465_v48 }
 0x45b   :  { %542 = vpow2.f32 %v467_v49 }
 0x45c   :  { %v462_v50 = vpop.f32.mrf.mxu3 }
 0x45d   :  { %v463_v51 = vadd.f32 %v541_v45, %v462_v50 }
 0x45f   :  { %v466_v52 = vsub.f32 0.0, %v463_v51 }
 0x461   :  { %v543_v53 = vpop.eup %542  ;;  %v469_v54 = vmul.f32 1.442695, %v466_v52 }
 0x462   :  { %v471_v55 = vadd.f32 1.0, %v543_v53 }
 0x463   :  { %544 = vpow2.f32 %v469_v54 }
 0x464   :  { %546 = vrcp.f32 %v471_v55  ;;  %v484_v61 = vand.u32 2147483648, %v471_v55  ;;  %v482_v63 = vand.u32 2147483647, %v471_v55  ;;  %vm478_vm1 = vweird.f32 %v471_v55 }
 0x466   :  { %v485_v2 = vor.u32 1.1754944e-38, %v484_v61  ;;  %vm483_vm3 = vcmp.eq.f32.partialorder %v482_v63, 8.507059e+37 }
 0x469   :  { %v545_v56 = vpop.eup %544 }
 0x46a   :  { %v547_v57 = vpop.eup %546  ;;  %v472_v58 = vadd.f32 1.0, %v545_v56 }
 0x46b   :  { %v474_v59 = vmul.f32 %v547_v57, %v471_v55  ;;  %vm479_vm0 = vweird.f32 %v547_v57 }
 0x46c   :  { %548 = vrcp.f32 %v472_v58  ;;  %vm480_vm2 = vmor %vm478_vm1, %vm479_vm0  ;;  %v498_v7 = vand.u32 2147483648, %v472_v58  ;;  %v496_v9 = vand.u32 2147483647, %v472_v58  ;;  %vm492_vm5 = vweird.f32 %v472_v58 }
 0x46d   :  { %v475_v60 = vsub.f32 1.0, %v474_v59 }
 0x46e   :  { %v499_v11 = vor.u32 1.1754944e-38, %v498_v7  ;;  %vm497_vm7 = vcmp.eq.f32.partialorder %v496_v9, 8.507059e+37 }
 0x46f   :  { %v476_v62 = vmul.f32 %v547_v57, %v475_v60 }
 0x471   :  { %v477_v0 = vadd.f32 %v547_v57, %v476_v62 }
 0x472   :  { %v549_v1 = vpop.eup %548 }
 0x473   :  { %v488_v3 = vmul.f32 %v549_v1, %v472_v58  ;;  %v481_v4 = vsel %vm480_vm2, %v547_v57, %v477_v0  ;;  %vm493_vm4 = vweird.f32 %v549_v1 }
 0x474   :  { %v486_v5 = vsel %vm483_vm3, %v485_v2, %v481_v4  ;;  %vm494_vm6 = vmor %vm492_vm5, %vm493_vm4 }
 0x475   :  { %v489_v6 = vsub.f32 1.0, %v488_v3  ;;  %501 = vst [vmem:[#allocation11] sm:$0xff] %v486_v5 }
 0x477   :  { %v490_v8 = vmul.f32 %v549_v1, %v489_v6 }
 0x479   :  { %v491_v10 = vadd.f32 %v549_v1, %v490_v8 }
 0x47b   :  { %v495_v12 = vsel %vm494_vm6, %v549_v1, %v491_v10 }
 0x47c   :  { %v500_v13 = vsel %vm497_vm7, %v499_v11, %v495_v12 }
 0x47d   :  { %502 = vst [vmem:[#allocation11 + $0x8] sm:$0xff] %v500_v13 }
 0x47e   :  { %515 = dma.vmem_to_hbm [thread:$0]  %s508_s18, 256, %s510_s21, [#allocation4], %s703_s26, %s703_s26, %s704_s27  }
 0x47f   :  { %700 = dma.done.wait [#allocation4], 256  }
 0x480   :  { %701 = vsyncadd [#allocation4], 4294967040 }
 0x481   :  { %520 = vsyncpa [#allocation3], 1 }
 0x482   :  { %521 = vsyncpa [#allocation6], 1 }
 0x483   :  { %522 = vsyncpa [#allocation9], 1 }
 0x484   :  { %523 = vsyncpa [#allocation4], 1 }

// kernel: tpu_custom_call.1
= control target key start
LH: loop header
LB: loop body
LE: loop exit
PB: predicated region body
PF: predicated region fallthrough
CT: control target
= control target key end

     0   :  { %10 = vsyncpa [#allocation3], 0  ;;  %s772_s0 = inlined_call_operand.hbm [shape: f32[16,128], index: 0, kind: input, shape index: {}]   ;;  %s773_s1 = inlined_call_operand.hbm [shape: f32[4,128,128], index: 1, kind: input, shape index: {}]   ;;  %s774_s2 = inlined_call_operand.hbm [shape: f32[4,1,128], index: 2, kind: input, shape index: {}]   ;;  %s775_s3 = inlined_call_operand.hbm [shape: f32[4,128,128], index: 3, kind: input, shape index: {}]   ;;  %s776_s4 = inlined_call_operand.hbm [shape: f32[4,1,128], index: 4, kind: input, shape index: {}]   ;;  %s777_s5 = inlined_call_operand.hbm [shape: f32[16,128], index: 5, kind: output, shape index: {}]  }
   0x1   :  { %11 = vsyncpa [#allocation6], 0 }
   0x2   :  { %12 = vsyncpa [#allocation9], 0 }
   0x3   :  { %13 = vsyncpa [#allocation4], 0  ;;  %s31_s20 = sshll.u32 %s773_s1, 4  ;;  %s702_s21 = smov [#allocation5]   ;;  %s32_s20 = int_to_ptr.hbm [resolvable:$true] %s31_s20 }
   0x4   :  { %s33_s22 = sshll.u32 %s702_s21, 4  ;;  %s57_s25 = sshll.u32 %s775_s3, 4  ;;  %s34_s22 = int_to_ptr.vmem [resolvable:$true] %s33_s22  ;;  %s58_s25 = int_to_ptr.hbm [resolvable:$true] %s57_s25 }
   0x5   :  { %s703_s26 = smov 128   ;;  %s704_s27 = smov 8  }
   0x6   :  { %39 = dma.hbm_to_vmem [thread:$0]  %s32_s20, 8192, %s34_s22, [#allocation6], %s703_s26, %s703_s26, %s704_s27  }
   0x7   :  { %s705_s28 = smov [#allocation8]   ;;  %s18_s1 = sshll.u32 %s772_s0, 4  ;;  %s19_s1 = int_to_ptr.hbm [resolvable:$true] %s18_s1 }
   0x8   :  { %s59_s29 = sshll.u32 %s705_s28, 4  ;;  %s44_s8 = sshll.u32 %s774_s2, 4  ;;  %s60_s29 = int_to_ptr.vmem [resolvable:$true] %s59_s29  ;;  %s45_s8 = int_to_ptr.hbm [resolvable:$true] %s44_s8 }
   0x9   :  { %65 = dma.hbm_to_vmem [thread:$0]  %s58_s25, 8192, %s60_s29, [#allocation9], %s703_s26, %s703_s26, %s704_s27  }
   0xa   :  { %s706_s9 = smov [#allocation2]   ;;  %s707_s11 = smov [#allocation7]  }
   0xb   :  { %s20_s10 = sshll.u32 %s706_s9, 4  ;;  %s46_s0 = sshll.u32 %s707_s11, 4  ;;  %s21_s10 = int_to_ptr.vmem [resolvable:$true] %s20_s10  ;;  %s47_s0 = int_to_ptr.vmem [resolvable:$true] %s46_s0 }
   0xc   :  { %26 = dma.hbm_to_vmem [thread:$0]  %s19_s1, 256, %s21_s10, [#allocation3], %s703_s26, %s703_s26, %s704_s27  }
   0xd   :  { %s708_s12 = smov 16   ;;  %s709_s13 = smov 1  }
   0xe   :  { %52 = dma.hbm_to_vmem [thread:$0]  %s45_s8, 64, %s47_s0, [#allocation6], %s708_s12, %s708_s12, %s709_s13  }
   0xf   :  { %s70_s16 = sshll.u32 %s776_s4, 4  ;;  %s710_s2 = smov [#allocation10]   ;;  %s71_s16 = int_to_ptr.hbm [resolvable:$true] %s70_s16 }
  0x10   :  { %s72_s17 = sshll.u32 %s710_s2, 4  ;;  %s73_s17 = int_to_ptr.vmem [resolvable:$true] %s72_s17 }
  0x11   :  { %78 = dma.hbm_to_vmem [thread:$0]  %s71_s16, 64, %s73_s17, [#allocation9], %s708_s12, %s708_s12, %s709_s13  }
  0x12   :  { %694 = dma.done.wait [#allocation3], 256  }
  0x13   :  { %695 = vsyncadd [#allocation3], 4294967040 }
  0x14   :  { %696 = dma.done.wait [#allocation6], 8256  }
  0x15   :  { %697 = vsyncadd [#allocation6], 4294959040 }
  0x16   :  { %698 = dma.done.wait [#allocation9], 8256  }
  0x17   :  { %699 = vsyncadd [#allocation9], 4294959040  ;;  %v116_v0 = vld [vmem:[#allocation5 + $0x78] sm:$0xff]  ;;  %v115_v1 = vld [vmem:[#allocation5 + $0x70] sm:$0xff]  ;;  %s711_s4 = smov [#allocation11]   ;;  %s509_s21 = sshll.u32 %s777_s5, 4  ;;  %s510_s21 = int_to_ptr.hbm [resolvable:$true] %s509_s21 }
  0x18   :  { %121 = vmatpush.msra.mxu0 %v116_v0  ;;  %v114_v2 = vld [vmem:[#allocation5 + $0x68] sm:$0xff]  ;;  %v113_v3 = vld [vmem:[#allocation5 + $0x60] sm:$0xff]  ;;  %v112_v4 = vld [vmem:[#allocation5 + $0x58] sm:$0xff]  ;;  %s507_s18 = sshll.u32 %s711_s4, 4  ;;  %s508_s18 = int_to_ptr.vmem [resolvable:$true] %s507_s18 }
  0x19   :  { %v111_v5 = vld [vmem:[#allocation5 + $0x50] sm:$0xff]  ;;  %v161_v6 = vld [vmem:[#allocation8 + $0x78] sm:$0xff]  ;;  %v110_v8 = vld [vmem:[#allocation5 + $0x48] sm:$0xff] }
  0x1a   :  { %122 = vmatpush.msra.mxu0 %v115_v1  ;;  %v160_v7 = vld [vmem:[#allocation8 + $0x70] sm:$0xff]  ;;  %166 = vmatpush.msra.mxu1 %v161_v6  ;;  %v159_v9 = vld [vmem:[#allocation8 + $0x68] sm:$0xff]  ;;  %v109_v10 = vld [vmem:[#allocation5 + $0x40] sm:$0xff] }
  0x1b   :  { %v158_v11 = vld [vmem:[#allocation8 + $0x60] sm:$0xff]  ;;  %v108_v12 = vld [vmem:[#allocation5 + $0x38] sm:$0xff]  ;;  %v107_v14 = vld [vmem:[#allocation5 + $0x30] sm:$0xff] }
  0x1c   :  { %123 = vmatpush.msra.mxu0 %v114_v2  ;;  %167 = vmatpush.msra.mxu1 %v160_v7  ;;  %v157_v13 = vld [vmem:[#allocation8 + $0x58] sm:$0xff]  ;;  %v156_v15 = vld [vmem:[#allocation8 + $0x50] sm:$0xff]  ;;  %v106_v16 = vld [vmem:[#allocation5 + $0x28] sm:$0xff] }
  0x1d   :  { %v155_v17 = vld [vmem:[#allocation8 + $0x48] sm:$0xff]  ;;  %v105_v18 = vld [vmem:[#allocation5 + $0x20] sm:$0xff]  ;;  %v104_v20 = vld [vmem:[#allocation5 + $0x18] sm:$0xff] }
  0x1e   :  { %124 = vmatpush.msra.mxu0 %v113_v3  ;;  %168 = vmatpush.msra.mxu1 %v159_v9  ;;  %v154_v19 = vld [vmem:[#allocation8 + $0x40] sm:$0xff]  ;;  %v153_v21 = vld [vmem:[#allocation8 + $0x38] sm:$0xff]  ;;  %v103_v22 = vld [vmem:[#allocation5 + $0x10] sm:$0xff] }
  0x1f   :  { %v152_v23 = vld [vmem:[#allocation8 + $0x30] sm:$0xff]  ;;  %v102_v24 = vld [vmem:[#allocation5 + $0x8] sm:$0xff]  ;;  %v101_v26 = vld [vmem:[#allocation5] sm:$0xff] }
  0x20   :  { %125 = vmatpush.msra.mxu0 %v112_v4  ;;  %169 = vmatpush.msra.mxu1 %v158_v11  ;;  %v151_v25 = vld [vmem:[#allocation8 + $0x28] sm:$0xff]  ;;  %v150_v27 = vld [vmem:[#allocation8 + $0x20] sm:$0xff]  ;;  %v149_v29 = vld [vmem:[#allocation8 + $0x18] sm:$0xff] }
  0x21   :  { %v99_v28 = vld [vmem:[#allocation2] sm:$0xff]  ;;  %v100_v30 = vld [vmem:[#allocation2 + $0x8] sm:$0xff]  ;;  %v146_v33 = vld [vmem:[#allocation8] sm:$0xff] }
  0x22   :  { %126 = vmatpush.msra.mxu0 %v111_v5  ;;  %170 = vmatpush.msra.mxu1 %v157_v13  ;;  %v148_v31 = vld [vmem:[#allocation8 + $0x10] sm:$0xff]  ;;  %v147_v32 = vld [vmem:[#allocation8 + $0x8] sm:$0xff]  ;;  %v202_v37 = vld [vmem:[#allocation5 + $0xe0] sm:$0xff] }
  0x23   :  { %v205_v34 = vld [vmem:[#allocation5 + $0xf8] sm:$0xff]  ;;  %v204_v35 = vld [vmem:[#allocation5 + $0xf0] sm:$0xff]  ;;  %v203_v36 = vld [vmem:[#allocation5 + $0xe8] sm:$0xff] }
  0x24   :  { %127 = vmatpush.msra.mxu0 %v110_v8  ;;  %171 = vmatpush.msra.mxu1 %v156_v15  ;;  %v201_v38 = vld [vmem:[#allocation5 + $0xd8] sm:$0xff]  ;;  %v200_v39 = vld [vmem:[#allocation5 + $0xd0] sm:$0xff]  ;;  %v199_v40 = vld [vmem:[#allocation5 + $0xc8] sm:$0xff] }
  0x25   :  { %211 = vmatpush.msra.mxu2 %v205_v34  ;;  %v198_v41 = vld [vmem:[#allocation5 + $0xc0] sm:$0xff]  ;;  %v197_v42 = vld [vmem:[#allocation5 + $0xb8] sm:$0xff]  ;;  %v196_v44 = vld [vmem:[#allocation5 + $0xb0] sm:$0xff] }
  0x26   :  { %128 = vmatpush.msra.mxu0 %v109_v10  ;;  %172 = vmatpush.msra.mxu1 %v155_v17  ;;  %v534_v43 = vld [vmem:[#allocation7] ss:$0 sm:$0xff]  ;;  %v195_v45 = vld [vmem:[#allocation5 + $0xa8] sm:$0xff]  ;;  %v193_v50 = vld [vmem:[#allocation5 + $0x98] sm:$0xff] }
  0x27   :  { %212 = vmatpush.msra.mxu2 %v204_v35  ;;  %v194_v48 = vld [vmem:[#allocation5 + $0xa0] sm:$0xff]  ;;  %v192_v51 = vld [vmem:[#allocation5 + $0x90] sm:$0xff]  ;;  %v191_v55 = vld [vmem:[#allocation5 + $0x88] sm:$0xff] }
  0x28   :  { %129 = vmatpush.msra.mxu0 %v108_v12  ;;  %173 = vmatpush.msra.mxu1 %v154_v19  ;;  %v190_v56 = vld [vmem:[#allocation5 + $0x80] sm:$0xff]  ;;  %v251_v58 = vld [vmem:[#allocation8 + $0xf0] sm:$0xff]  ;;  %v250_v59 = vld [vmem:[#allocation8 + $0xe8] sm:$0xff] }
  0x29   :  { %213 = vmatpush.msra.mxu2 %v203_v36  ;;  %v252_v57 = vld [vmem:[#allocation8 + $0xf8] sm:$0xff]  ;;  %v249_v60 = vld [vmem:[#allocation8 + $0xe0] sm:$0xff]  ;;  %v247_v62 = vld [vmem:[#allocation8 + $0xd0] sm:$0xff] }
  0x2a   :  { %130 = vmatpush.msra.mxu0 %v107_v14  ;;  %174 = vmatpush.msra.mxu1 %v153_v21  ;;  %v248_v61 = vld [vmem:[#allocation8 + $0xd8] sm:$0xff]  ;;  %v246_v63 = vld [vmem:[#allocation8 + $0xc8] sm:$0xff]  ;;  %v245_v0 = vld [vmem:[#allocation8 + $0xc0] sm:$0xff] }
  0x2b   :  { %214 = vmatpush.msra.mxu2 %v202_v37  ;;  %258 = vmatpush.msra.mxu3 %v252_v57  ;;  %v244_v1 = vld [vmem:[#allocation8 + $0xb8] sm:$0xff]  ;;  %v243_v2 = vld [vmem:[#allocation8 + $0xb0] sm:$0xff]  ;;  %v535_v3 = vld [vmem:[#allocation10] ss:$0 sm:$0xff] }
  0x2c   :  { %131 = vmatpush.msra.mxu0 %v106_v16  ;;  %175 = vmatpush.msra.mxu1 %v152_v23  ;;  %v242_v4 = vld [vmem:[#allocation8 + $0xa8] sm:$0xff]  ;;  %v241_v5 = vld [vmem:[#allocation8 + $0xa0] sm:$0xff]  ;;  %v240_v8 = vld [vmem:[#allocation8 + $0x98] sm:$0xff] }
  0x2d   :  { %215 = vmatpush.msra.mxu2 %v201_v38  ;;  %259 = vmatpush.msra.mxu3 %v251_v58  ;;  %v239_v11 = vld [vmem:[#allocation8 + $0x90] sm:$0xff]  ;;  %v238_v12 = vld [vmem:[#allocation8 + $0x88] sm:$0xff]  ;;  %v237_v13 = vld [vmem:[#allocation8 + $0x80] sm:$0xff] }
  0x2e   :  { %132 = vmatpush.msra.mxu0 %v105_v18  ;;  %176 = vmatpush.msra.mxu1 %v151_v25  ;;  %v297_v14 = vld [vmem:[#allocation5 + $0x178] sm:$0xff]  ;;  %v296_v15 = vld [vmem:[#allocation5 + $0x170] sm:$0xff]  ;;  %v295_v16 = vld [vmem:[#allocation5 + $0x168] sm:$0xff] }
  0x2f   :  { %216 = vmatpush.msra.mxu2 %v200_v39  ;;  %260 = vmatpush.msra.mxu3 %v250_v59  ;;  %v294_v17 = vld [vmem:[#allocation5 + $0x160] sm:$0xff]  ;;  %v293_v18 = vld [vmem:[#allocation5 + $0x158] sm:$0xff]  ;;  %v292_v19 = vld [vmem:[#allocation5 + $0x150] sm:$0xff] }
  0x30   :  { %133 = vmatpush.msra.mxu0 %v104_v20  ;;  %177 = vmatpush.msra.mxu1 %v150_v27  ;;  %v291_v20 = vld [vmem:[#allocation5 + $0x148] sm:$0xff]  ;;  %v290_v21 = vld [vmem:[#allocation5 + $0x140] sm:$0xff]  ;;  %v343_v38 = vld [vmem:[#allocation8 + $0x170] sm:$0xff] }
  0x31   :  { %217 = vmatpush.msra.mxu2 %v199_v40  ;;  %261 = vmatpush.msra.mxu3 %v249_v60  ;;  %v536_v23 = vld [vmem:[#allocation7 + $0x1] ss:$0 sm:$0xff]  ;;  %v287_v25 = vld [vmem:[#allocation5 + $0x128] sm:$0xff]  ;;  %v389_v58 = vld [vmem:[#allocation5 + $0x1f8] sm:$0xff] }
  0x32   :  { %134 = vmatpush.msra.mxu0 %v103_v22  ;;  %178 = vmatpush.msra.mxu1 %v149_v29  ;;  %v289_v22 = vld [vmem:[#allocation5 + $0x138] sm:$0xff]  ;;  %v283_v35 = vld [vmem:[#allocation5 + $0x108] sm:$0xff]  ;;  %v282_v36 = vld [vmem:[#allocation5 + $0x100] sm:$0xff] }
  0x33   :  { %218 = vmatpush.msra.mxu2 %v198_v41  ;;  %262 = vmatpush.msra.mxu3 %v248_v61  ;;  %v344_v37 = vld [vmem:[#allocation8 + $0x178] sm:$0xff]  ;;  %v342_v39 = vld [vmem:[#allocation8 + $0x168] sm:$0xff]  ;;  %v341_v40 = vld [vmem:[#allocation8 + $0x160] sm:$0xff] }
  0x34   :  { %135 = vmatpush.msra.mxu0 %v102_v24  ;;  %179 = vmatpush.msra.mxu1 %v148_v31  ;;  %v288_v24 = vld [vmem:[#allocation5 + $0x130] sm:$0xff]  ;;  %v340_v41 = vld [vmem:[#allocation8 + $0x158] sm:$0xff]  ;;  %v329_v57 = vld [vmem:[#allocation8 + $0x100] sm:$0xff] }
  0x35   :  { %219 = vmatpush.msra.mxu2 %v197_v42  ;;  %263 = vmatpush.msra.mxu3 %v247_v62  ;;  %v284_v31 = vld [vmem:[#allocation5 + $0x110] sm:$0xff]  ;;  %v387_v60 = vld [vmem:[#allocation5 + $0x1e8] sm:$0xff]  ;;  %v386_v61 = vld [vmem:[#allocation5 + $0x1e0] sm:$0xff] }
  0x36   :  { %136 = vmatpush.msra.mxu0 %v101_v26  ;;  %180 = vmatpush.msra.mxu1 %v147_v32  ;;  %v339_v42 = vld [vmem:[#allocation8 + $0x150] sm:$0xff] }
  0x37   :  { %137 = vmatmul.f32.vlgmr.msra.gmra.mxu0 %v99_v28  ;;  %220 = vmatpush.msra.mxu2 %v196_v44  ;;  %v286_v28 = vld [vmem:[#allocation5 + $0x120] sm:$0xff]  ;;  %v388_v59 = vld [vmem:[#allocation5 + $0x1f0] sm:$0xff]  ;;  %v385_v62 = vld [vmem:[#allocation5 + $0x1d8] sm:$0xff] }
  0x38   :  { %181 = vmatpush.msra.mxu1 %v146_v33  ;;  %264 = vmatpush.msra.mxu3 %v246_v63  ;;  %v337_v44 = vld [vmem:[#allocation8 + $0x140] sm:$0xff]  ;;  %v384_v63 = vld [vmem:[#allocation5 + $0x1d0] sm:$0xff] }
  0x39   :  { %221 = vmatpush.msra.mxu2 %v195_v45  ;;  %303 = vmatpush.msrb.mxu0 %v297_v14  ;;  %v336_v45 = vld [vmem:[#allocation8 + $0x138] sm:$0xff] }
  0x3a   :  { %265 = vmatpush.msra.mxu3 %v245_v0  ;;  %350 = vmatpush.msrb.mxu1 %v344_v37  ;;  %v383_v0 = vld [vmem:[#allocation5 + $0x1c8] sm:$0xff] }
  0x3b   :  { %222 = vmatpush.msra.mxu2 %v194_v48  ;;  %304 = vmatpush.msrb.mxu0 %v296_v15  ;;  %v334_v48 = vld [vmem:[#allocation8 + $0x128] sm:$0xff]  ;;  %v421_v37 = vld [vmem:[#allocation8 + $0x180] sm:$0xff] }
  0x3c   :  { %266 = vmatpush.msra.mxu3 %v244_v1  ;;  %351 = vmatpush.msrb.mxu1 %v343_v38  ;;  %v382_v1 = vld [vmem:[#allocation5 + $0x1c0] sm:$0xff]  ;;  %v375_v15 = vld [vmem:[#allocation5 + $0x188] sm:$0xff] }
  0x3d   :  { %223 = vmatpush.msra.mxu2 %v193_v50  ;;  %305 = vmatpush.msrb.mxu0 %v295_v16  ;;  %v374_v16 = vld [vmem:[#allocation5 + $0x180] sm:$0xff] }
  0x3e   :  { %267 = vmatpush.msra.mxu3 %v243_v2  ;;  %352 = vmatpush.msrb.mxu1 %v342_v39  ;;  %v381_v2 = vld [vmem:[#allocation5 + $0x1b8] sm:$0xff]  ;;  %v540_v38 = vld [vmem:[#allocation7 + $0x3] ss:$0 sm:$0xff] }
  0x3f   :  { %140 = vmatmul.f32.gmra.mxu0 %v100_v30  ;;  %224 = vmatpush.msra.mxu2 %v192_v51  ;;  %v285_v30 = vld [vmem:[#allocation5 + $0x118] sm:$0xff] }
  0x40   :  { %268 = vmatpush.msra.mxu3 %v242_v4  ;;  %306 = vmatpush.msrb.mxu0 %v294_v17  ;;  %v380_v4 = vld [vmem:[#allocation5 + $0x1b0] sm:$0xff]  ;;  %v436_v17 = vld [vmem:[#allocation8 + $0x1f8] sm:$0xff] }
  0x41   :  { %225 = vmatpush.msra.mxu2 %v191_v55  ;;  %353 = vmatpush.msrb.mxu1 %v341_v40  ;;  %v331_v55 = vld [vmem:[#allocation8 + $0x110] sm:$0xff] }
  0x42   :  { %269 = vmatpush.msra.mxu3 %v241_v5  ;;  %307 = vmatpush.msrb.mxu0 %v293_v18  ;;  %v379_v5 = vld [vmem:[#allocation5 + $0x1a8] sm:$0xff]  ;;  %v435_v18 = vld [vmem:[#allocation8 + $0x1f0] sm:$0xff] }
  0x43   :  { %226 = vmatpush.msra.mxu2 %v190_v56  ;;  %354 = vmatpush.msrb.mxu1 %v340_v41  ;;  %v330_v56 = vld [vmem:[#allocation8 + $0x108] sm:$0xff] }
  0x44   :  { %270 = vmatpush.msra.mxu3 %v240_v8  ;;  %308 = vmatpush.msrb.mxu0 %v292_v19  ;;  %v378_v8 = vld [vmem:[#allocation5 + $0x1a0] sm:$0xff]  ;;  %v434_v19 = vld [vmem:[#allocation8 + $0x1e8] sm:$0xff] }
  0x45   :  { %355 = vmatpush.msrb.mxu1 %v339_v42  ;;  %395 = vmatpush.msrb.mxu2 %v389_v58 }
  0x46   :  { %271 = vmatpush.msra.mxu3 %v239_v11  ;;  %309 = vmatpush.msrb.mxu0 %v291_v20  ;;  %v376_v11 = vld [vmem:[#allocation5 + $0x190] sm:$0xff]  ;;  %v433_v20 = vld [vmem:[#allocation8 + $0x1e0] sm:$0xff] }
  0x47   :  { %396 = vmatpush.msrb.mxu2 %v388_v59 }
  0x48   :  { %272 = vmatpush.msra.mxu3 %v238_v12  ;;  %310 = vmatpush.msrb.mxu0 %v290_v21  ;;  %v432_v21 = vld [vmem:[#allocation8 + $0x1d8] sm:$0xff] }
  0x49   :  { %397 = vmatpush.msrb.mxu2 %v387_v60 }
  0x4a   :  { %273 = vmatpush.msra.mxu3 %v237_v13  ;;  %311 = vmatpush.msrb.mxu0 %v289_v22  ;;  %v431_v22 = vld [vmem:[#allocation8 + $0x1d0] sm:$0xff] }
  0x4b   :  { %398 = vmatpush.msrb.mxu2 %v386_v61 }
  0x4c   :  { %312 = vmatpush.msrb.mxu0 %v288_v24  ;;  %442 = vmatpush.msrb.mxu3 %v436_v17  ;;  %v429_v24 = vld [vmem:[#allocation8 + $0x1c0] sm:$0xff] }
  0x4d   :  { %399 = vmatpush.msrb.mxu2 %v385_v62 }
  0x4e   :  { %313 = vmatpush.msrb.mxu0 %v287_v25  ;;  %443 = vmatpush.msrb.mxu3 %v435_v18  ;;  %v428_v25 = vld [vmem:[#allocation8 + $0x1b8] sm:$0xff] }
  0x4f   :  { %400 = vmatpush.msrb.mxu2 %v384_v63 }
  0x50   :  { %314 = vmatpush.msrb.mxu0 %v286_v28  ;;  %444 = vmatpush.msrb.mxu3 %v434_v19  ;;  %v426_v28 = vld [vmem:[#allocation8 + $0x1a8] sm:$0xff] }
  0x51   :  { %401 = vmatpush.msrb.mxu2 %v383_v0 }
  0x52   :  { %315 = vmatpush.msrb.mxu0 %v285_v30  ;;  %445 = vmatpush.msrb.mxu3 %v433_v20 }
  0x53   :  { %402 = vmatpush.msrb.mxu2 %v382_v1 }
  0x54   :  { %316 = vmatpush.msrb.mxu0 %v284_v31  ;;  %446 = vmatpush.msrb.mxu3 %v432_v21 }
  0x55   :  { %403 = vmatpush.msrb.mxu2 %v381_v2 }
  0x56   :  { %317 = vmatpush.msrb.mxu0 %v283_v35  ;;  %447 = vmatpush.msrb.mxu3 %v431_v22  ;;  %v423_v35 = vld [vmem:[#allocation8 + $0x190] sm:$0xff] }
  0x57   :  { %404 = vmatpush.msrb.mxu2 %v380_v4 }
  0x58   :  { %318 = vmatpush.msrb.mxu0 %v282_v36  ;;  %v422_v36 = vld [vmem:[#allocation8 + $0x188] sm:$0xff] }
  0x59   :  { %405 = vmatpush.msrb.mxu2 %v379_v5 }
  0x5b   :  { %406 = vmatpush.msrb.mxu2 %v378_v8 }
  0xb4   :  { %v138_v46 = vpop.f32.mrf.mxu0 }
  0xb5   :  { %v139_v47 = vadd.f32 %v534_v43, %v138_v46  ;;  %v335_v46 = vld [vmem:[#allocation8 + $0x130] sm:$0xff] }
  0xb7   :  { %v144_v49 = vmax.f32 %v139_v47, 0.0  ;;  %v537_v47 = vld [vmem:[#allocation10 + $0x1] ss:$0 sm:$0xff] }
  0xb9   :  { %182 = vmatmul.f32.vlgmr.msra.gmra.mxu1 %v144_v49  ;;  %v333_v49 = vld [vmem:[#allocation8 + $0x120] sm:$0xff] }
  0xbc   :  { %v141_v52 = vpop.f32.mrf.mxu0 }
  0xbd   :  { %v142_v53 = vadd.f32 %v534_v43, %v141_v52  ;;  %v338_v43 = vld [vmem:[#allocation8 + $0x148] sm:$0xff]  ;;  %v332_v52 = vld [vmem:[#allocation8 + $0x118] sm:$0xff] }
  0xbe   :  { %356 = vmatpush.msrb.mxu1 %v338_v43 }
  0xbf   :  { %v145_v54 = vmax.f32 %v142_v53, 0.0 }
  0xc0   :  { %357 = vmatpush.msrb.mxu1 %v337_v44 }
  0xc1   :  { %185 = vmatmul.f32.gmra.mxu1 %v145_v54 }
  0xc2   :  { %358 = vmatpush.msrb.mxu1 %v336_v45  ;;  %v541_v45 = vld [vmem:[#allocation10 + $0x3] ss:$0 sm:$0xff] }
  0xc4   :  { %359 = vmatpush.msrb.mxu1 %v335_v46 }
  0xc6   :  { %360 = vmatpush.msrb.mxu1 %v334_v48 }
  0xc8   :  { %361 = vmatpush.msrb.mxu1 %v333_v49 }
  0xca   :  { %362 = vmatpush.msrb.mxu1 %v332_v52 }
  0xcc   :  { %363 = vmatpush.msrb.mxu1 %v331_v55 }
  0xce   :  { %364 = vmatpush.msrb.mxu1 %v330_v56 }
  0xd0   :  { %365 = vmatpush.msrb.mxu1 %v329_v57 }
 0x136   :  { %v183_v6 = vpop.f32.mrf.mxu1 }
 0x137   :  { %v184_v7 = vadd.f32 %v535_v3, %v183_v6 }
 0x139   :  { %227 = vmatmul.f32.vlgmr.msra.gmra.mxu2 %v184_v7 }
 0x13e   :  { %v186_v9 = vpop.f32.mrf.mxu1 }
 0x13f   :  { %v187_v10 = vadd.f32 %v535_v3, %v186_v9  ;;  %v538_v3 = vld [vmem:[#allocation7 + $0x2] ss:$0 sm:$0xff] }
 0x141   :  { %230 = vmatmul.f32.gmra.mxu2 %v187_v10  ;;  %v377_v10 = vld [vmem:[#allocation5 + $0x198] sm:$0xff] }
 0x142   :  { %407 = vmatpush.msrb.mxu2 %v377_v10 }
 0x144   :  { %408 = vmatpush.msrb.mxu2 %v376_v11 }
 0x146   :  { %409 = vmatpush.msrb.mxu2 %v375_v15 }
 0x148   :  { %410 = vmatpush.msrb.mxu2 %v374_v16 }
 0x1bc   :  { %v228_v26 = vpop.f32.mrf.mxu2 }
 0x1bd   :  { %v229_v27 = vadd.f32 %v536_v23, %v228_v26  ;;  %v427_v26 = vld [vmem:[#allocation8 + $0x1b0] sm:$0xff] }
 0x1bf   :  { %v234_v29 = vmax.f32 %v229_v27, 0.0  ;;  %v539_v27 = vld [vmem:[#allocation10 + $0x2] ss:$0 sm:$0xff] }
 0x1c1   :  { %274 = vmatmul.f32.vlgmr.msra.gmra.mxu3 %v234_v29  ;;  %v425_v29 = vld [vmem:[#allocation8 + $0x1a0] sm:$0xff] }
 0x1c4   :  { %v231_v32 = vpop.f32.mrf.mxu2 }
 0x1c5   :  { %v232_v33 = vadd.f32 %v536_v23, %v231_v32  ;;  %v430_v23 = vld [vmem:[#allocation8 + $0x1c8] sm:$0xff]  ;;  %v424_v32 = vld [vmem:[#allocation8 + $0x198] sm:$0xff] }
 0x1c6   :  { %448 = vmatpush.msrb.mxu3 %v430_v23 }
 0x1c7   :  { %v235_v34 = vmax.f32 %v232_v33, 0.0 }
 0x1c8   :  { %449 = vmatpush.msrb.mxu3 %v429_v24 }
 0x1c9   :  { %277 = vmatmul.f32.gmra.mxu3 %v235_v34 }
 0x1ca   :  { %450 = vmatpush.msrb.mxu3 %v428_v25 }
 0x1cc   :  { %451 = vmatpush.msrb.mxu3 %v427_v26 }
 0x1ce   :  { %452 = vmatpush.msrb.mxu3 %v426_v28 }
 0x1d0   :  { %453 = vmatpush.msrb.mxu3 %v425_v29 }
 0x1d2   :  { %454 = vmatpush.msrb.mxu3 %v424_v32 }
 0x1d4   :  { %455 = vmatpush.msrb.mxu3 %v423_v35 }
 0x1d6   :  { %456 = vmatpush.msrb.mxu3 %v422_v36 }
 0x1d8   :  { %457 = vmatpush.msrb.mxu3 %v421_v37 }
 0x244   :  { %v275_v50 = vpop.f32.mrf.mxu3 }
 0x245   :  { %v276_v51 = vadd.f32 %v537_v47, %v275_v50 }
 0x247   :  { %319 = vmatmul.f32.vlgmr.msrb.gmra.mxu0 %v276_v51 }
 0x24c   :  { %v278_v53 = vpop.f32.mrf.mxu3 }
 0x24d   :  { %v279_v54 = vadd.f32 %v537_v47, %v278_v53 }
 0x24f   :  { %322 = vmatmul.f32.gmra.mxu0 %v279_v54 }
 0x2c4   :  { %v320_v6 = vpop.f32.mrf.mxu0 }
 0x2c5   :  { %v321_v7 = vadd.f32 %v538_v3, %v320_v6 }
 0x2c7   :  { %v326_v9 = vmax.f32 %v321_v7, 0.0 }
 0x2c9   :  { %366 = vmatmul.f32.vlgmr.msrb.gmra.mxu1 %v326_v9 }
 0x2cc   :  { %v323_v12 = vpop.f32.mrf.mxu0 }
 0x2cd   :  { %v324_v13 = vadd.f32 %v538_v3, %v323_v12 }
 0x2cf   :  { %v327_v14 = vmax.f32 %v324_v13, 0.0 }
 0x2d1   :  { %369 = vmatmul.f32.gmra.mxu1 %v327_v14 }
 0x346   :  { %v367_v30 = vpop.f32.mrf.mxu1 }
 0x347   :  { %v368_v31 = vadd.f32 %v539_v27, %v367_v30 }
 0x349   :  { %411 = vmatmul.f32.vlgmr.msrb.gmra.mxu2 %v368_v31 }
 0x34e   :  { %v370_v33 = vpop.f32.mrf.mxu1 }
 0x34f   :  { %v371_v34 = vadd.f32 %v539_v27, %v370_v33 }
 0x351   :  { %414 = vmatmul.f32.gmra.mxu2 %v371_v34 }
 0x3cc   :  { %v412_v39 = vpop.f32.mrf.mxu2 }
 0x3cd   :  { %v413_v40 = vadd.f32 %v540_v38, %v412_v39 }
 0x3cf   :  { %v418_v41 = vmax.f32 %v413_v40, 0.0 }
 0x3d1   :  { %458 = vmatmul.f32.vlgmr.msrb.gmra.mxu3 %v418_v41 }
 0x3d4   :  { %v415_v42 = vpop.f32.mrf.mxu2 }
 0x3d5   :  { %v416_v43 = vadd.f32 %v540_v38, %v415_v42 }
 0x3d7   :  { %v419_v44 = vmax.f32 %v416_v43, 0.0 }
 0x3d9   :  { %461 = vmatmul.f32.gmra.mxu3 %v419_v44 }
 0x454   :  { %v459_v46 = vpop.f32.mrf.mxu3 }
 0x455   :  { %v460_v47 = vadd.f32 %v541_v45, %v459_v46 }
 0x457   :  { %v465_v48 = vsub.f32 0.0, %v460_v47 }
 0x459   :  { %v467_v49 = vmul.f32 1.442695, %v465_v48 }
 0x45b   :  { %542 = vpow2.f32 %v467_v49 }
 0x45c   :  { %v462_v50 = vpop.f32.mrf.mxu3 }
 0x45d   :  { %v463_v51 = vadd.f32 %v541_v45, %v462_v50 }
 0x45f   :  { %v466_v52 = vsub.f32 0.0, %v463_v51 }
 0x461   :  { %v543_v53 = vpop.eup %542  ;;  %v469_v54 = vmul.f32 1.442695, %v466_v52 }
 0x462   :  { %v471_v55 = vadd.f32 1.0, %v543_v53 }
 0x463   :  { %544 = vpow2.f32 %v469_v54 }
 0x464   :  { %546 = vrcp.f32 %v471_v55  ;;  %v484_v61 = vand.u32 2147483648, %v471_v55  ;;  %v482_v63 = vand.u32 2147483647, %v471_v55  ;;  %vm478_vm1 = vweird.f32 %v471_v55 }
 0x466   :  { %v485_v2 = vor.u32 1.1754944e-38, %v484_v61  ;;  %vm483_vm3 = vcmp.eq.f32.partialorder %v482_v63, 8.507059e+37 }
 0x469   :  { %v545_v56 = vpop.eup %544 }
 0x46a   :  { %v547_v57 = vpop.eup %546  ;;  %v472_v58 = vadd.f32 1.0, %v545_v56 }
 0x46b   :  { %v474_v59 = vmul.f32 %v547_v57, %v471_v55  ;;  %vm479_vm0 = vweird.f32 %v547_v57 }
 0x46c   :  { %548 = vrcp.f32 %v472_v58  ;;  %vm480_vm2 = vmor %vm478_vm1, %vm479_vm0  ;;  %v498_v7 = vand.u32 2147483648, %v472_v58  ;;  %v496_v9 = vand.u32 2147483647, %v472_v58  ;;  %vm492_vm5 = vweird.f32 %v472_v58 }
 0x46d   :  { %v475_v60 = vsub.f32 1.0, %v474_v59 }
 0x46e   :  { %v499_v11 = vor.u32 1.1754944e-38, %v498_v7  ;;  %vm497_vm7 = vcmp.eq.f32.partialorder %v496_v9, 8.507059e+37 }
 0x46f   :  { %v476_v62 = vmul.f32 %v547_v57, %v475_v60 }
 0x471   :  { %v477_v0 = vadd.f32 %v547_v57, %v476_v62 }
 0x472   :  { %v549_v1 = vpop.eup %548 }
 0x473   :  { %v488_v3 = vmul.f32 %v549_v1, %v472_v58  ;;  %v481_v4 = vsel %vm480_vm2, %v547_v57, %v477_v0  ;;  %vm493_vm4 = vweird.f32 %v549_v1 }
 0x474   :  { %v486_v5 = vsel %vm483_vm3, %v485_v2, %v481_v4  ;;  %vm494_vm6 = vmor %vm492_vm5, %vm493_vm4 }
 0x475   :  { %v489_v6 = vsub.f32 1.0, %v488_v3  ;;  %501 = vst [vmem:[#allocation11] sm:$0xff] %v486_v5 }
 0x477   :  { %v490_v8 = vmul.f32 %v549_v1, %v489_v6 }
 0x479   :  { %v491_v10 = vadd.f32 %v549_v1, %v490_v8 }
 0x47b   :  { %v495_v12 = vsel %vm494_vm6, %v549_v1, %v491_v10 }
 0x47c   :  { %v500_v13 = vsel %vm497_vm7, %v499_v11, %v495_v12 }
 0x47d   :  { %502 = vst [vmem:[#allocation11 + $0x8] sm:$0xff] %v500_v13 }
 0x47e   :  { %515 = dma.vmem_to_hbm [thread:$0]  %s508_s18, 256, %s510_s21, [#allocation4], %s703_s26, %s703_s26, %s704_s27  }
 0x47f   :  { %700 = dma.done.wait [#allocation4], 256  }
 0x480   :  { %701 = vsyncadd [#allocation4], 4294967040 }
 0x481   :  { %520 = vsyncpa [#allocation3], 1 }
 0x482   :  { %521 = vsyncpa [#allocation6], 1 }
 0x483   :  { %522 = vsyncpa [#allocation9], 1 }
 0x484   :  { %523 = vsyncpa [#allocation4], 1 }

</bundles_post_ra>
